<compile_context>
chip_gen: v5e
topology: v5e:2x2
jax: 0.10.0
libtpu: 0.0.40
codegen_flags: <defaults>
</compile_context>

<pallas_src>
import functools

import jax
import jax.numpy as jnp
from jax.experimental import pallas as pl
from jax.experimental.pallas import tpu as pltpu


def _cdiv(a, b):
    return -(-a // b)


# ----------------------------------------------------------------------------
# Fused single-pass kernel (per-image tile fits VMEM).
# ----------------------------------------------------------------------------
def _cca_fused_kernel(x_ref, w1_ref, b1_ref, w2_ref, b2_ref, o_ref, *, hw):
    # x_ref: (Bn, C, HW)   w1_ref: (Cr, C)  b1_ref: (1, Cr)
    # w2_ref: (C, Cr)      b2_ref: (1, C)   o_ref: (Bn, C, HW)
    inv_hw = 1.0 / hw
    xv = x_ref[...]                                        # (Bn, C, HW)

    # Two-pass (deviation form) statistics straight from VMEM: exact parity
    # with the PyTorch biased variance, still a single HBM read of x.
    mean = jnp.sum(xv, axis=-1) * inv_hw                   # (Bn, C)
    dev = xv - mean[:, :, None]
    var = jnp.sum(dev * dev, axis=-1) * inv_hw
    y = jnp.sqrt(var) + mean                               # std + avg_pool  (Bn, C)

    # Tiny squeeze-excite on the VPU/XLU (C -> Cr -> C).
    z1 = jnp.sum(y[:, None, :] * w1_ref[...][None, :, :], axis=-1) + b1_ref[...]
    z1 = jnp.maximum(z1, 0.0)                              # (Bn, Cr)
    z2 = jnp.sum(z1[:, None, :] * w2_ref[...][None, :, :], axis=-1) + b2_ref[...]
    z2 = jax.nn.sigmoid(z2)                                # (Bn, C)

    # Explicit VMEM re-read (keeps vreg pressure low across the reduction).
    o_ref[...] = x_ref[...] * z2[:, :, None]


# ----------------------------------------------------------------------------
# Two-stage spatially-tiled path (large H*W).
# ----------------------------------------------------------------------------
def _stats_gate_kernel(x_ref, w1_ref, b1_ref, w2_ref, b2_ref, gate_ref,
                       s1_ref, s2_ref, *, hw, chunk):
    # x_ref: (1, C, chunk)  gate_ref: (1, C, 1)  s1/s2: (1, C) VMEM scratch
    k = pl.program_id(1)

    @pl.when(k == 0)
    def _init():
        s1_ref[...] = jnp.zeros_like(s1_ref)
        s2_ref[...] = jnp.zeros_like(s2_ref)

    xv = x_ref[...]
    if hw % chunk != 0:
        # Mask the tail chunk's out-of-bounds lanes (block padding is garbage).
        lane = k * chunk + jax.lax.broadcasted_iota(jnp.int32, xv.shape, 2)
        xv = jnp.where(lane < hw, xv, 0.0)

    # One-pass sum / sum-of-squares accumulation (f32).  Clamp at finalize
    # guards one-pass cancellation; for post-conv activations with |mean|>>std
    # a per-tile shift could be added for tighter parity.
    s1_ref[...] += jnp.sum(xv, axis=-1)
    s2_ref[...] += jnp.sum(xv * xv, axis=-1)

    @pl.when(k == pl.num_programs(1) - 1)
    def _finalize():
        inv_hw = 1.0 / hw
        mean = s1_ref[...] * inv_hw                         # (1, C)
        var = jnp.maximum(s2_ref[...] * inv_hw - mean * mean, 0.0)
        y = jnp.sqrt(var) + mean
        z1 = jnp.sum(y[:, None, :] * w1_ref[...][None, :, :], axis=-1) + b1_ref[...]
        z1 = jnp.maximum(z1, 0.0)
        z2 = jnp.sum(z1[:, None, :] * w2_ref[...][None, :, :], axis=-1) + b2_ref[...]
        gate_ref[...] = jax.nn.sigmoid(z2)[:, :, None]      # (1, C, 1)


def _apply_gate_kernel(x_ref, gate_ref, o_ref):
    # x_ref: (1, C, chunk)   gate_ref: (1, C, 1)   o_ref: (1, C, chunk)
    o_ref[...] = x_ref[...] * gate_ref[...]


# ----------------------------------------------------------------------------
# Blocking heuristics (generation-aware, best effort).
# ----------------------------------------------------------------------------
def _chip_info():
    kind = ""
    try:
        kind = jax.devices()[0].device_kind.lower()
    except Exception:
        pass
    if "v7" in kind or "7x" in kind:
        # 2 TensorCores / chip, 64 MiB VMEM, ~3.2 TB/s HBM.
        return dict(num_tc=2, vmem_cap=64 << 20, target_tile_bytes=6 << 20)
    if "v6" in kind:
        # 1 TC, 128 MiB VMEM, ~1.4 TB/s HBM.
        return dict(num_tc=1, vmem_cap=128 << 20, target_tile_bytes=12 << 20)
    if "v5p" in kind:
        return dict(num_tc=2, vmem_cap=128 << 20, target_tile_bytes=8 << 20)
    if "v5" in kind:
        # v5e: 1 TC, 128 MiB physical (16 MiB scoped default -- we raise it).
        return dict(num_tc=1, vmem_cap=128 << 20, target_tile_bytes=4 << 20)
    # Unknown backend: conservative defaults.
    return dict(num_tc=1, vmem_cap=64 << 20, target_tile_bytes=4 << 20)


def _pick_batch_block(n, bytes_per_img, target_bytes, num_tc):
    """Largest batch block under the tile budget; keep multi-TC chips balanced."""
    bn = max(1, min(n, target_bytes // max(1, bytes_per_img)))
    if num_tc > 1 and n > 1:
        # At least num_tc grid steps, rounded up to a multiple of num_tc so the
        # cores get equal work under dimension_semantics=("parallel",).
        bn = min(bn, _cdiv(n, num_tc))
        steps = _cdiv(n, bn)
        if steps % num_tc:
            steps = _cdiv(steps, num_tc) * num_tc
            bn = max(1, _cdiv(n, steps))
    return bn


# ----------------------------------------------------------------------------
# Wrapper.
# ----------------------------------------------------------------------------
def cca_layer1_pallas(x_nchw, w1, b1, w2, b2, *, max_fused_tile_bytes=None):
    """x_nchw: (N, C, H, W).  w1: (Cr, C), b1: (Cr,), w2: (C, Cr), b2: (C,)."""
    N, C, H, W = x_nchw.shape
    Cr = w1.shape[0]
    HW = H * W

    x = x_nchw.reshape(N, C, HW)          # free view of NCHW
    b1r = b1.reshape(1, Cr)
    b2r = b2.reshape(1, C)

    itemsize = x.dtype.itemsize
    bytes_per_img = C * HW * itemsize

    chip = _chip_info()
    target = chip["target_tile_bytes"] if max_fused_tile_bytes is None \
        else int(max_fused_tile_bytes)

    if bytes_per_img <= target:
        # ---------------- fused single-pass path ----------------
        bn = _pick_batch_block(N, bytes_per_img, target, chip["num_tc"])
        grid_n = _cdiv(N, bn)             # cdiv blocking: tail block is masked by Pallas
        tile_bytes = bn * bytes_per_img
        # 2 in-bufs + 2 out-bufs + ~2 tile-sized temporaries + slack.
        vmem_limit = min(chip["vmem_cap"],
                         max(16 << 20, 6 * tile_bytes + (4 << 20)))

        out = pl.pallas_call(
            functools.partial(_cca_fused_kernel, hw=HW),
            out_shape=jax.ShapeDtypeStruct((N, C, HW), x.dtype),
            grid_spec=pltpu.PrefetchScalarGridSpec(
                num_scalar_prefetch=0,
                grid=(grid_n,),
                in_specs=[
                    pl.BlockSpec((bn, C, HW), lambda n: (n, 0, 0)),
                    pl.BlockSpec((Cr, C), lambda n: (0, 0)),
                    pl.BlockSpec((1, Cr), lambda n: (0, 0)),
                    pl.BlockSpec((C, Cr), lambda n: (0, 0)),
                    pl.BlockSpec((1, C), lambda n: (0, 0)),
                ],
                out_specs=pl.BlockSpec((bn, C, HW), lambda n: (n, 0, 0)),
            ),
            compiler_params=pltpu.CompilerParams(
                dimension_semantics=("parallel",),
                vmem_limit_bytes=int(vmem_limit),
            ),
            cost_estimate=pl.CostEstimate(
                flops=int(4 * N * C * HW),
                transcendentals=int(2 * N * C),
                bytes_accessed=int(2 * N * C * HW * itemsize),
            ),
        )(x, w1, b1r, w2, b2r)
        return out.reshape(N, C, H, W)

    # ---------------- two-stage spatially-tiled path ----------------
    # Chunk the lane (spatial) axis in multiples of 128; tail chunk is masked
    # in-kernel, so no wrapper padding copy is needed.
    chunk = max(128, (target // (C * itemsize)) // 128 * 128)
    chunk = min(chunk, _cdiv(HW, 128) * 128)
    nchunk = _cdiv(HW, chunk)
    tile_bytes = C * chunk * itemsize
    vmem_limit = min(chip["vmem_cap"], max(16 << 20, 6 * tile_bytes + (4 << 20)))

    # Kernel A: streaming stats + squeeze-excite -> per-(N, C) gate.
    gate = pl.pallas_call(
        functools.partial(_stats_gate_kernel, hw=HW, chunk=chunk),
        out_shape=jax.ShapeDtypeStruct((N, C, 1), jnp.float32),
        grid_spec=pltpu.PrefetchScalarGridSpec(
            num_scalar_prefetch=0,
            grid=(N, nchunk),
            in_specs=[
                pl.BlockSpec((1, C, chunk), lambda n, k: (n, 0, k)),
                pl.BlockSpec((Cr, C), lambda n, k: (0, 0)),
                pl.BlockSpec((1, Cr), lambda n, k: (0, 0)),
                pl.BlockSpec((C, Cr), lambda n, k: (0, 0)),
                pl.BlockSpec((1, C), lambda n, k: (0, 0)),
            ],
            out_specs=pl.BlockSpec((1, C, 1), lambda n, k: (n, 0, 0)),
            scratch_shapes=[
                pltpu.VMEM((1, C), jnp.float32),   # running sum
                pltpu.VMEM((1, C), jnp.float32),   # running sum of squares
            ],
        ),
        compiler_params=pltpu.CompilerParams(
            dimension_semantics=("parallel", "arbitrary"),
            vmem_limit_bytes=int(vmem_limit),
        ),
        cost_estimate=pl.CostEstimate(
            flops=int(3 * N * C * HW),
            transcendentals=int(2 * N * C),
            bytes_accessed=int(N * C * HW * itemsize),
        ),
    )(x, w1, b1r, w2, b2r)

    # Kernel B: broadcast-gate multiply, chunk by chunk.
    out = pl.pallas_call(
        _apply_gate_kernel,
        out_shape=jax.ShapeDtypeStruct((N, C, HW), x.dtype),
        grid_spec=pltpu.PrefetchScalarGridSpec(
            num_scalar_prefetch=0,
            grid=(N, nchunk),
            in_specs=[
                pl.BlockSpec((1, C, chunk), lambda n, k: (n, 0, k)),
                pl.BlockSpec((1, C, 1), lambda n, k: (n, 0, 0)),
            ],
            out_specs=pl.BlockSpec((1, C, chunk), lambda n, k: (n, 0, k)),
        ),
        compiler_params=pltpu.CompilerParams(
            dimension_semantics=("parallel", "parallel"),
            vmem_limit_bytes=int(vmem_limit),
        ),
        cost_estimate=pl.CostEstimate(
            flops=int(N * C * HW),
            transcendentals=0,
            bytes_accessed=int(2 * N * C * HW * itemsize),
        ),
    )(x, gate)
    return out.reshape(N, C, H, W)


# ----------------------------------------------------------------------------
# Pure-JAX reference mirroring the PyTorch module (NCHW, biased two-pass var).
# ----------------------------------------------------------------------------
def _reference_jax(x, w1, b1, w2, b2):
    mean = jnp.mean(x, axis=(2, 3), keepdims=True)
    var = jnp.mean((x - mean) ** 2, axis=(2, 3), keepdims=True)
    y = jnp.sqrt(var) + mean                                # std + avg_pool
    y = y[..., 0, 0]                                        # (N, C)
    z1 = jnp.maximum(y @ w1.T + b1, 0.0)                    # (N, Cr)
    z2 = jax.nn.sigmoid(z1 @ w2.T + b2)                     # (N, C)
    return x * z2[:, :, None, None]


if __name__ == "__main__":
    C = 32
    reduction = 16
    Cr = C // reduction

    key = jax.random.PRNGKey(0)
    kx1, kx2, kx3, k1, k2, k3, k4 = jax.random.split(key, 7)
    w1 = 0.1 * jax.random.normal(k1, (Cr, C), dtype=jnp.float32)
    b1 = 0.1 * jax.random.normal(k2, (Cr,), dtype=jnp.float32)
    w2 = 0.1 * jax.random.normal(k3, (C, Cr), dtype=jnp.float32)
    b2 = 0.1 * jax.random.normal(k4, (C,), dtype=jnp.float32)

    # Case 1: fused single-pass path; HW = 256 (multiple of 128 -> lane-dense).
    x1 = jax.random.normal(kx1, (2, C, 16, 16), dtype=jnp.float32)
    o1 = jax.block_until_ready(cca_layer1_pallas(x1, w1, b1, w2, b2))
    r1 = _reference_jax(x1, w1, b1, w2, b2)
    e1 = jnp.max(jnp.abs(o1 - r1))
    assert jnp.allclose(o1, r1, atol=1e-5, rtol=1e-5), f"case1 max err {e1}"

    # Case 2: two-stage spatially-tiled path (forced via a tiny tile budget),
    # HW = 400 (not a multiple of 128 -> exercises tail-chunk masking), odd N.
    x2 = jax.random.normal(kx2, (3, C, 20, 20), dtype=jnp.float32)
    o2 = jax.block_until_ready(
        cca_layer1_pallas(x2, w1, b1, w2, b2, max_fused_tile_bytes=16 << 10))
    r2 = _reference_jax(x2, w1, b1, w2, b2)
    e2 = jnp.max(jnp.abs(o2 - r2))
    assert jnp.allclose(o2, r2, atol=1e-5, rtol=1e-5), f"case2 max err {e2}"

    # Case 3: fused path with cdiv batch blocking (bn does not divide N).
    x3 = jax.random.normal(kx3, (3, C, 16, 16), dtype=jnp.float32)
    o3 = jax.block_until_ready(
        cca_layer1_pallas(x3, w1, b1, w2, b2, max_fused_tile_bytes=64 << 10))
    r3 = _reference_jax(x3, w1, b1, w2, b2)
    e3 = jnp.max(jnp.abs(o3 - r3))
    assert jnp.allclose(o3, r3, atol=1e-5, rtol=1e-5), f"case3 max err {e3}"

    print("KERNEL_OK")
</pallas_src>

<mosaic_0001>
module attributes {stable_mosaic.version = 11 : i64} {
  func.func @_cca_fused_kernel(%arg0: i32, %arg1: memref<2x32x256xf32, #tpu.memory_space<vmem>>, %arg2: memref<2x32xf32, #tpu.memory_space<vmem>>, %arg3: memref<1x2xf32, #tpu.memory_space<vmem>>, %arg4: memref<32x2xf32, #tpu.memory_space<vmem>>, %arg5: memref<1x32xf32, #tpu.memory_space<vmem>>, %arg6: memref<2x32x256xf32, #tpu.memory_space<vmem>>) attributes {dimension_semantics = [#tpu.dimension_semantics<parallel>], iteration_bounds = array<i64: 1>, scalar_prefetch = 0 : i64, scratch_operands = 0 : i64, tpu.core_type = #tpu.core_type<tc>, window_params = [{transform_indices = @transform_0, window_bounds = array<i64: 2, 32, 256>}, {pipeline_mode = #tpu.pipeline_mode<synchronous>, transform_indices = @transform_1, window_bounds = array<i64: 2, 32>}, {pipeline_mode = #tpu.pipeline_mode<synchronous>, transform_indices = @transform_2, window_bounds = array<i64: 1, 2>}, {pipeline_mode = #tpu.pipeline_mode<synchronous>, transform_indices = @transform_3, window_bounds = array<i64: 32, 2>}, {pipeline_mode = #tpu.pipeline_mode<synchronous>, transform_indices = @transform_4, window_bounds = array<i64: 1, 32>}, {transform_indices = @transform_5, window_bounds = array<i64: 2, 32, 256>}]} {
    %c0 = arith.constant 0 : index
    %c0_0 = arith.constant 0 : index
    %c0_1 = arith.constant 0 : index
    %0 = vector.load %arg1[%c0, %c0_0, %c0_1] : memref<2x32x256xf32, #tpu.memory_space<vmem>>, vector<2x32x256xf32>
    %cst = arith.constant dense<0.000000e+00> : vector<2x32xf32>
    %1 = vector.multi_reduction <add>, %0, %cst [2] : vector<2x32x256xf32> to vector<2x32xf32>
    %cst_2 = arith.constant 3.906250e-03 : f32
    %2 = vector.broadcast %cst_2 : f32 to vector<2x32xf32>
    %3 = arith.mulf %1, %2 : vector<2x32xf32>
    %4 = vector.shape_cast %3 : vector<2x32xf32> to vector<2x32x1xf32>
    %5 = vector.broadcast %4 : vector<2x32x1xf32> to vector<2x32x256xf32>
    %6 = arith.subf %0, %5 : vector<2x32x256xf32>
    %7 = arith.mulf %6, %6 : vector<2x32x256xf32>
    %cst_3 = arith.constant dense<0.000000e+00> : vector<2x32xf32>
    %8 = vector.multi_reduction <add>, %7, %cst_3 [2] : vector<2x32x256xf32> to vector<2x32xf32>
    %cst_4 = arith.constant 3.906250e-03 : f32
    %9 = vector.broadcast %cst_4 : f32 to vector<2x32xf32>
    %10 = arith.mulf %8, %9 : vector<2x32xf32>
    %11 = math.sqrt %10 : vector<2x32xf32>
    %12 = arith.addf %11, %3 : vector<2x32xf32>
    %13 = vector.shape_cast %12 : vector<2x32xf32> to vector<2x1x32xf32>
    %c0_5 = arith.constant 0 : index
    %c0_6 = arith.constant 0 : index
    %14 = vector.load %arg2[%c0_5, %c0_6] : memref<2x32xf32, #tpu.memory_space<vmem>>, vector<2x32xf32>
    %15 = vector.shape_cast %14 : vector<2x32xf32> to vector<1x2x32xf32>
    %16 = vector.broadcast %13 : vector<2x1x32xf32> to vector<2x2x32xf32>
    %17 = vector.broadcast %15 : vector<1x2x32xf32> to vector<2x2x32xf32>
    %18 = arith.mulf %16, %17 : vector<2x2x32xf32>
    %cst_7 = arith.constant dense<0.000000e+00> : vector<2x2xf32>
    %19 = vector.multi_reduction <add>, %18, %cst_7 [2] : vector<2x2x32xf32> to vector<2x2xf32>
    %c0_8 = arith.constant 0 : index
    %c0_9 = arith.constant 0 : index
    %20 = vector.load %arg3[%c0_8, %c0_9] : memref<1x2xf32, #tpu.memory_space<vmem>>, vector<1x2xf32>
    %21 = vector.broadcast %20 : vector<1x2xf32> to vector<2x2xf32>
    %22 = arith.addf %19, %21 : vector<2x2xf32>
    %cst_10 = arith.constant 0.000000e+00 : f32
    %23 = vector.broadcast %cst_10 : f32 to vector<2x2xf32>
    %24 = arith.maximumf %22, %23 : vector<2x2xf32>
    %25 = vector.shape_cast %24 : vector<2x2xf32> to vector<2x1x2xf32>
    %c0_11 = arith.constant 0 : index
    %c0_12 = arith.constant 0 : index
    %26 = vector.load %arg4[%c0_11, %c0_12] : memref<32x2xf32, #tpu.memory_space<vmem>>, vector<32x2xf32>
    %27 = vector.shape_cast %26 : vector<32x2xf32> to vector<1x32x2xf32>
    %28 = vector.broadcast %25 : vector<2x1x2xf32> to vector<2x32x2xf32>
    %29 = vector.broadcast %27 : vector<1x32x2xf32> to vector<2x32x2xf32>
    %30 = arith.mulf %28, %29 : vector<2x32x2xf32>
    %cst_13 = arith.constant dense<0.000000e+00> : vector<2x32xf32>
    %31 = vector.multi_reduction <add>, %30, %cst_13 [2] : vector<2x32x2xf32> to vector<2x32xf32>
    %c0_14 = arith.constant 0 : index
    %c0_15 = arith.constant 0 : index
    %32 = vector.load %arg5[%c0_14, %c0_15] : memref<1x32xf32, #tpu.memory_space<vmem>>, vector<1x32xf32>
    %33 = vector.broadcast %32 : vector<1x32xf32> to vector<2x32xf32>
    %34 = arith.addf %31, %33 : vector<2x32xf32>
    %35 = arith.negf %34 : vector<2x32xf32>
    %36 = math.exp %35 : vector<2x32xf32>
    %cst_16 = arith.constant 1.000000e+00 : f32
    %37 = vector.broadcast %cst_16 : f32 to vector<2x32xf32>
    %38 = arith.addf %37, %36 : vector<2x32xf32>
    %39 = arith.divf %37, %38 : vector<2x32xf32>
    %c0_17 = arith.constant 0 : index
    %c0_18 = arith.constant 0 : index
    %c0_19 = arith.constant 0 : index
    %40 = vector.load %arg1[%c0_17, %c0_18, %c0_19] : memref<2x32x256xf32, #tpu.memory_space<vmem>>, vector<2x32x256xf32>
    %41 = vector.shape_cast %39 : vector<2x32xf32> to vector<2x32x1xf32>
    %42 = vector.broadcast %41 : vector<2x32x1xf32> to vector<2x32x256xf32>
    %43 = arith.mulf %40, %42 : vector<2x32x256xf32>
    %c0_20 = arith.constant 0 : index
    %c0_21 = arith.constant 0 : index
    %c0_22 = arith.constant 0 : index
    %44 = vector.load %arg6[%c0_20, %c0_21, %c0_22] : memref<2x32x256xf32, #tpu.memory_space<vmem>>, vector<2x32x256xf32>
    tpu.vector_store %arg6[%c0_20, %c0_21, %c0_22], %43 {strides = array<i32>} : memref<2x32x256xf32, #tpu.memory_space<vmem>>, vector<2x32x256xf32>,
    return
  }
  func.func @transform_0(%arg0: i32) -> (i32, i32, i32) {
    %c0_i32 = arith.constant 0 : i32
    %c0_i32_0 = arith.constant 0 : i32
    %c0_i32_1 = arith.constant 0 : i32
    return %arg0, %c0_i32, %c0_i32_0 : i32, i32, i32
  }
  func.func @transform_1(%arg0: i32) -> (i32, i32) {
    %c0_i32 = arith.constant 0 : i32
    %c0_i32_0 = arith.constant 0 : i32
    %c0_i32_1 = arith.constant 0 : i32
    return %c0_i32, %c0_i32_0 : i32, i32
  }
  func.func @transform_2(%arg0: i32) -> (i32, i32) {
    %c0_i32 = arith.constant 0 : i32
    %c0_i32_0 = arith.constant 0 : i32
    %c0_i32_1 = arith.constant 0 : i32
    return %c0_i32, %c0_i32_0 : i32, i32
  }
  func.func @transform_3(%arg0: i32) -> (i32, i32) {
    %c0_i32 = arith.constant 0 : i32
    %c0_i32_0 = arith.constant 0 : i32
    %c0_i32_1 = arith.constant 0 : i32
    return %c0_i32, %c0_i32_0 : i32, i32
  }
  func.func @transform_4(%arg0: i32) -> (i32, i32) {
    %c0_i32 = arith.constant 0 : i32
    %c0_i32_0 = arith.constant 0 : i32
    %c0_i32_1 = arith.constant 0 : i32
    return %c0_i32, %c0_i32_0 : i32, i32
  }
  func.func @transform_5(%arg0: i32) -> (i32, i32, i32) {
    %c0_i32 = arith.constant 0 : i32
    %c0_i32_0 = arith.constant 0 : i32
    %c0_i32_1 = arith.constant 0 : i32
    return %arg0, %c0_i32, %c0_i32_0 : i32, i32, i32
  }
}

</mosaic_0001>

<bundles_post_ra>
// kernel: tpu_custom_call.1
= control target key start
LH: loop header
LB: loop body
LE: loop exit
PB: predicated region body
PF: predicated region fallthrough
CT: control target
= control target key end

     0   :  { %10 = vsyncpa [#allocation3], 0  ;;  %s2400_s0 = inlined_call_operand.hbm [shape: f32[2,32,256], index: 0, kind: input, shape index: {}]   ;;  %s2401_s1 = inlined_call_operand.vmem [shape: f32[2,32], index: 1, kind: input, shape index: {}]   ;;  %s2402_s2 = inlined_call_operand.vmem [shape: f32[1,2], index: 2, kind: input, shape index: {}]   ;;  %s2403_s3 = inlined_call_operand.vmem [shape: f32[32,2], index: 3, kind: input, shape index: {}]   ;;  %s2404_s4 = inlined_call_operand.vmem [shape: f32[1,32], index: 4, kind: input, shape index: {}]   ;;  %s2405_s5 = inlined_call_operand.hbm [shape: f32[2,32,256], index: 5, kind: output, shape index: {}]  }
   0x1   :  { %11 = vsyncpa [#allocation4], 0  ;;  %s16_s20 = sshll.u32 %s2400_s0, 4  ;;  %s1631_s21 = smov [#allocation2]   ;;  %s17_s20 = int_to_ptr.hbm [resolvable:$true] %s16_s20 }
   0x2   :  { %s18_s22 = sshll.u32 %s1631_s21, 4  ;;  %s1632_s23 = smov 256   ;;  %s19_s22 = int_to_ptr.vmem [resolvable:$true] %s18_s22 }
   0x3   :  { %s1633_s24 = smov 16  }
   0x4   :  { %24 = dma.hbm_to_vmem [thread:$0]  %s17_s20, 2048, %s19_s22, [#allocation3], %s1632_s23, %s1632_s23, %s1633_s24  }
   0x5   :  { %1627 = dma.done.wait [#allocation3], 2048  }
   0x6   :  { %1628 = vsyncadd [#allocation3], 4294965248  ;;  %v256_v0 = vlaneseq  ;;  %v1684_v4 = vld [vmem:[#allocation2 + $0x40] sm:$0xff]  ;;  %v1686_v5 = vld [vmem:[#allocation2 + $0x48] sm:$0xff]  ;;  %s1467_s15 = sshll.u32 %s2405_s5, 4  ;;  %s1468_s15 = int_to_ptr.hbm [resolvable:$true] %s1467_s15 }
   0x7   :  { %v1688_v6 = vld [vmem:[#allocation2 + $0x20] sm:$0xff]  ;;  %v65_v7 = vadd.f32 %v1686_v5, %v1684_v4  ;;  %v1692_v8 = vld [vmem:[#allocation2 + $0x28] sm:$0xff]  ;;  %v1702_v13 = vld [vmem:[#allocation2 + $0x50] sm:$0xff] }
   0x8   :  { %v1673_v1 = vshrl.u32 %v256_v0, 7  ;;  %v1694_v9 = vld [vmem:[#allocation2] sm:$0xff]  ;;  %v1696_v10 = vld [vmem:[#allocation2 + $0x8] sm:$0xff]  ;;  %v59_v11 = vadd.f32 %v1692_v8, %v1688_v6  ;;  %v1704_v14 = vld [vmem:[#allocation2 + $0x58] sm:$0xff] }
   0x9   :  { %v53_v12 = vadd.f32 %v1696_v10, %v1694_v9  ;;  %66 = vadd.xlane.f32.xlu2 %v65_v7  ;;  %v1706_v15 = vld [vmem:[#allocation2 + $0x10] sm:$0xff]  ;;  %v1708_v16 = vld [vmem:[#allocation2 + $0x18] sm:$0xff]  ;;  %v68_v19 = vadd.f32 %v1704_v14, %v1702_v13  ;;  %v1720_v22 = vld [vmem:[#allocation2 + $0x60] sm:$0xff] }
   0xa   :  { %v1676_v2 = vadd.s32 8, %v1673_v1  ;;  %v1679_v3 = vadd.s32 16, %v1673_v1  ;;  %1493 = vset.pattern.permute.xlu1 %v1673_v1  ;;  %v1710_v17 = vld [vmem:[#allocation2 + $0x30] sm:$0xff]  ;;  %v1712_v18 = vld [vmem:[#allocation2 + $0x38] sm:$0xff]  ;;  %v56_v20 = vadd.f32 %v1708_v16, %v1706_v15  ;;  %v1722_v23 = vld [vmem:[#allocation2 + $0x68] sm:$0xff]  ;;  %v1736_v30 = vadd.s32 24, %v1673_v1 }
   0xb   :  { %60 = vadd.xlane.f32.xlu1 %v59_v11  ;;  %54 = vadd.xlane.f32.xlu0 %v53_v12  ;;  %v62_v21 = vadd.f32 %v1712_v18, %v1710_v17  ;;  %v1724_v24 = vld [vmem:[#allocation2 + $0x70] sm:$0xff]  ;;  %v1726_v25 = vld [vmem:[#allocation2 + $0x78] sm:$0xff]  ;;  %v71_v26 = vadd.f32 %v1722_v23, %v1720_v22  ;;  %v253_v28 = vld [vmem:[%s2401_s1] sm:$0x3] }
   0xc   :  { %1494 = vset.pattern.permute.xlu2 %v1676_v2  ;;  %1495 = vset.pattern.permute.xlu0 %v1679_v3  ;;  %v74_v27 = vadd.f32 %v1726_v25, %v1724_v24  ;;  %v255_v29 = vperm.slane %v253_v28, 0  ;;  %v280_v31 = vperm.slane %v253_v28, 1  ;;  %v1512_v32 = vld [vmem:[%s2402_s2] ss:$0 sm:$0xff] }
   0xd   :  { %v1746_v33 = vld [vmem:[%s2403_s3] sm:$0xff] }
   0xe   :  { %v463_v34 = vperm.slane %v1746_v33, 0  ;;  %v470_v35 = vperm.slane %v1746_v33, 1  ;;  %v477_v36 = vperm.slane %v1746_v33, 2  ;;  %v491_v37 = vperm.slane %v1746_v33, 4 }
   0xf   :  { %v498_v38 = vperm.slane %v1746_v33, 5  ;;  %v484_v39 = vperm.slane %v1746_v33, 3 }
  0x11   :  { %69 = vadd.xlane.f32.xlu2 %v68_v19 }
  0x13   :  { %57 = vadd.xlane.f32.xlu0 %v56_v20  ;;  %63 = vadd.xlane.f32.xlu1 %v62_v21 }
  0x1b   :  { %72 = vadd.xlane.f32.xlu0 %v71_v26  ;;  %75 = vadd.xlane.f32.xlu1 %v74_v27 }
  0x29   :  { %266 = vperm.xlu2 %1494, %v255_v29  }
  0x2f   :  { %272 = vperm.xlu0 %1495, %v255_v29  }
  0x31   :  { %1496 = vset.pattern.permute.xlu2 %v1736_v30 }
  0x34   :  { %260 = vperm.xlu1 %1493, %v255_v29  }
  0x37   :  { %1500 = vset.pattern.permute.xlu0 %v1673_v1 }
  0x39   :  { %278 = vperm.xlu2 %1496, %v255_v29  }
  0x3c   :  { %285 = vperm.xlu1 %1493, %v280_v31  }
  0x3f   :  { %448 = vperm.xlu0 %1500, %v1512_v32  }
  0x41   :  { %1497 = vset.pattern.permute.xlu2 %v1676_v2 }
  0x44   :  { %1498 = vset.pattern.permute.xlu1 %v1679_v3 }
  0x47   :  { %468 = vperm.xlu0 %1500, %v463_v34  }
  0x49   :  { %291 = vperm.xlu2 %1497, %v280_v31  }
  0x4c   :  { %297 = vperm.xlu1 %1498, %v280_v31  }
  0x4f   :  { %475 = vperm.xlu0 %1500, %v470_v35  }
  0x51   :  { %1499 = vset.pattern.permute.xlu2 %v1736_v30 }
  0x54   :  { %1502 = vset.pattern.permute.xlu1 %v1673_v1 }
  0x57   :  { %482 = vperm.xlu0 %1500, %v477_v36  }
  0x59   :  { %303 = vperm.xlu2 %1499, %v280_v31  }
  0x5c   :  { %496 = vperm.xlu1 %1502, %v491_v37  }
  0x5f   :  { %503 = vperm.xlu0 %1500, %v498_v38  }
  0x61   :  { %1501 = vset.pattern.permute.xlu2 %v1673_v1 }
  0x69   :  { %489 = vperm.xlu2 %1501, %v484_v39  }
  0x7c   :  { %v67_v40 = vpop.xlane.xlu2 %66 }
  0x7d   :  { %v1779_v59 = vmul.f32 0.00390625, %v67_v40 }
  0x7e   :  { %v61_v41 = vpop.xlane.xlu1 %60  ;;  %v55_v42 = vpop.xlane.xlu0 %54 }
  0x7f   :  { %v1759_v43 = vmul.f32 0.00390625, %v61_v41  ;;  %v1765_v46 = vmul.f32 0.00390625, %v55_v42  ;;  %v93_v12 = vsub.f32 %v1684_v4, %v1779_v59  ;;  %v505_v42 = vperm.slane %v1746_v33, 6 }
  0x81   :  { %v89_v44 = vsub.f32 %v1688_v6, %v1759_v43  ;;  %v90_v45 = vsub.f32 %v1692_v8, %v1759_v43  ;;  %v85_v55 = vsub.f32 %v1694_v9, %v1765_v46  ;;  %v86_v56 = vsub.f32 %v1696_v10, %v1765_v46 }
  0x82   :  { %v109_v26 = vmul.f32 %v93_v12, %v93_v12 }
  0x83   :  { %v105_v47 = vmul.f32 %v89_v44, %v89_v44  ;;  %v106_v48 = vmul.f32 %v90_v45, %v90_v45  ;;  %v101_v8 = vmul.f32 %v85_v55, %v85_v55  ;;  %v102_v9 = vmul.f32 %v86_v56, %v86_v56  ;;  %v457_v45 = vld [vmem:[%s2403_s3 + $0x10] sm:$0xff] }
  0x84   :  { %v70_v49 = vpop.xlane.xlu2 %69 }
  0x85   :  { %v123_v50 = vadd.f32 %v106_v48, %v105_v47  ;;  %v1767_v51 = vmul.f32 0.00390625, %v70_v49  ;;  %v117_v19 = vadd.f32 %v102_v9, %v101_v8  ;;  %v589_v47 = vperm.slane %v457_v45, 2 }
  0x86   :  { %v58_v52 = vpop.xlane.xlu0 %57  ;;  %v64_v53 = vpop.xlane.xlu1 %63 }
  0x87   :  { %v1769_v54 = vmul.f32 0.00390625, %v58_v52  ;;  %124 = vadd.xlane.f32.xlu1 %v123_v50  ;;  %v95_v57 = vsub.f32 %v1702_v13, %v1767_v51  ;;  %v96_v58 = vsub.f32 %v1704_v14, %v1767_v51  ;;  %v1785_v62 = vmul.f32 0.00390625, %v64_v53 }
  0x88   :  { %v94_v13 = vsub.f32 %v1686_v5, %v1779_v59  ;;  %v610_v50 = vperm.slane %v457_v45, 5 }
  0x89   :  { %v87_v60 = vsub.f32 %v1706_v15, %v1769_v54  ;;  %v88_v61 = vsub.f32 %v1708_v16, %v1769_v54  ;;  %v111_v63 = vmul.f32 %v95_v57, %v95_v57  ;;  %v112_v1 = vmul.f32 %v96_v58, %v96_v58 }
  0x8a   :  { %v91_v15 = vsub.f32 %v1710_v17, %v1785_v62  ;;  %v92_v16 = vsub.f32 %v1712_v18, %v1785_v62  ;;  %v110_v27 = vmul.f32 %v94_v13, %v94_v13  ;;  %v575_v57 = vperm.slane %v457_v45, 0  ;;  %v1513_v13 = vld [vmem:[%s2404_s4] ss:$0 sm:$0xff] }
  0x8b   :  { %v103_v6 = vmul.f32 %v87_v60, %v87_v60  ;;  %v104_v7 = vmul.f32 %v88_v61, %v88_v61  ;;  %v132_v10 = vadd.f32 %v112_v1, %v111_v63  ;;  %v582_v58 = vperm.slane %v457_v45, 1 }
  0x8c   :  { %v107_v28 = vmul.f32 %v91_v15, %v91_v15  ;;  %v108_v4 = vmul.f32 %v92_v16, %v92_v16  ;;  %v129_v18 = vadd.f32 %v110_v27, %v109_v26  ;;  %v596_v63 = vperm.slane %v457_v45, 3 }
  0x8d   :  { %v120_v11 = vadd.f32 %v104_v7, %v103_v6  ;;  %v603_v1 = vperm.slane %v457_v45, 4  ;;  %v1824_v7 = vpop.permute.xlu2 %266 }
  0x8e   :  { %v76_v14 = vpop.xlane.xlu1 %75  ;;  %v73_v21 = vpop.xlane.xlu0 %72  ;;  %v126_v31 = vadd.f32 %v108_v4, %v107_v28 }
  0x8f   :  { %133 = vadd.xlane.f32.xlu1 %v132_v10  ;;  %121 = vadd.xlane.f32.xlu0 %v120_v11  ;;  %v1795_v20 = vmul.f32 0.00390625, %v76_v14  ;;  %v1797_v29 = vmul.f32 0.00390625, %v73_v21  ;;  %v617_v10 = vperm.slane %v457_v45, 6  ;;  %v624_v11 = vperm.slane %v457_v45, 7 }
  0x91   :  { %v99_v5 = vsub.f32 %v1724_v24, %v1795_v20  ;;  %v100_v17 = vsub.f32 %v1726_v25, %v1795_v20  ;;  %v97_v35 = vsub.f32 %v1720_v22, %v1797_v29  ;;  %v98_v36 = vsub.f32 %v1722_v23, %v1797_v29  ;;  %v456_v25 = vld [vmem:[%s2403_s3 + $0x8] sm:$0xff] }
  0x92   :  { %118 = vadd.xlane.f32.xlu2 %v117_v19  ;;  %v526_v40 = vperm.slane %v456_v25, 1  ;;  %v547_v41 = vperm.slane %v456_v25, 4  ;;  %v568_v22 = vperm.slane %v456_v25, 7  ;;  %v512_v23 = vperm.slane %v1746_v33, 7  ;;  %v458_v33 = vld [vmem:[%s2403_s3 + $0x18] sm:$0xff] }
  0x93   :  { %v115_v32 = vmul.f32 %v99_v5, %v99_v5  ;;  %v116_v34 = vmul.f32 %v100_v17, %v100_v17  ;;  %v113_v38 = vmul.f32 %v97_v35, %v97_v35  ;;  %v114_v39 = vmul.f32 %v98_v36, %v98_v36 }
  0x94   :  { %v519_v44 = vperm.slane %v456_v25, 0  ;;  %v533_v48 = vperm.slane %v456_v25, 2  ;;  %v540_v49 = vperm.slane %v456_v25, 3  ;;  %v554_v52 = vperm.slane %v456_v25, 5 }
  0x95   :  { %v138_v37 = vadd.f32 %v116_v34, %v115_v32  ;;  %v135_v24 = vadd.f32 %v114_v39, %v113_v38  ;;  %v561_v53 = vperm.slane %v456_v25, 6  ;;  %v631_v56 = vperm.slane %v458_v33, 0  ;;  %v1833_v14 = vpop.permute.xlu2 %278 }
  0x96   :  { %v652_v61 = vperm.slane %v458_v33, 3  ;;  %v673_v9 = vperm.slane %v458_v33, 6  ;;  %v638_v16 = vperm.slane %v458_v33, 1  ;;  %v645_v19 = vperm.slane %v458_v33, 2 }
  0x97   :  { %130 = vadd.xlane.f32.xlu0 %v129_v18  ;;  %v659_v27 = vperm.slane %v458_v33, 4  ;;  %v666_v28 = vperm.slane %v458_v33, 5  ;;  %v1634_v18 = vmov 0  }
  0x9a   :  { %127 = vadd.xlane.f32.xlu2 %v126_v31  ;;  %v680_v31 = vperm.slane %v458_v33, 7 }
  0x9f   :  { %139 = vadd.xlane.f32.xlu0 %v138_v37 }
  0xa1   :  { %v1815_v55 = vpop.permute.xlu0 %272 }
  0xa2   :  { %136 = vadd.xlane.f32.xlu2 %v135_v24 }
  0xa3   :  { %v1839_v26 = vpop.permute.xlu2 %291 }
  0xa6   :  { %v1822_v6 = vpop.permute.xlu1 %260 }
  0xa8   :  { %531 = vperm.xlu1 %1502, %v526_v40  }
  0xae   :  { %v1828_v12 = vpop.permute.xlu1 %285 }
  0xb0   :  { %552 = vperm.xlu1 %1502, %v547_v41  }
  0xb1   :  { %v1820_v60 = vpop.permute.xlu0 %448 }
  0xb3   :  { %510 = vperm.xlu0 %1500, %v505_v42   ;;  %v1845_v17 = vpop.permute.xlu2 %303 }
  0xb8   :  { %573 = vperm.xlu1 %1502, %v568_v22  }
  0xb9   :  { %v1826_v8 = vpop.permute.xlu0 %468 }
  0xba   :  { %524 = vperm.xlu2 %1501, %v519_v44  }
  0xbb   :  { %517 = vperm.xlu0 %1500, %v512_v23  }
  0xbe   :  { %v1837_v21 = vpop.permute.xlu1 %297 }
  0xc0   :  { %594 = vperm.xlu1 %1502, %v589_v47  }
  0xc1   :  { %v1835_v15 = vpop.permute.xlu0 %475 }
  0xc2   :  { %545 = vperm.xlu2 %1501, %v540_v49  }
  0xc3   :  { %538 = vperm.xlu0 %1500, %v533_v48   ;;  %v1851_v36 = vpop.permute.xlu2 %489 }
  0xc8   :  { %615 = vperm.xlu1 %1502, %v610_v50  }
  0xc9   :  { %v1841_v4 = vpop.permute.xlu0 %482 }
  0xca   :  { %566 = vperm.xlu2 %1501, %v561_v53  }
  0xcb   :  { %559 = vperm.xlu0 %1500, %v554_v52  }
  0xce   :  { %v1843_v5 = vpop.permute.xlu1 %496 }
  0xd0   :  { %636 = vperm.xlu1 %1502, %v631_v56  }
  0xd1   :  { %v1848_v32 = vpop.permute.xlu0 %503 }
  0xd2   :  { %587 = vperm.xlu2 %1501, %v582_v58  }
  0xd3   :  { %580 = vperm.xlu0 %1500, %v575_v57  }
  0xd8   :  { %657 = vperm.xlu1 %1502, %v652_v61  }
  0xda   :  { %608 = vperm.xlu2 %1501, %v603_v1  }
  0xdb   :  { %601 = vperm.xlu0 %1500, %v596_v63  }
  0xe0   :  { %678 = vperm.xlu1 %1502, %v673_v9  }
  0xe2   :  { %629 = vperm.xlu2 %1501, %v624_v11  }
  0xe3   :  { %622 = vperm.xlu0 %1500, %v617_v10  }
  0xe8   :  { %1205 = vperm.xlu1 %1502, %v1513_v13  }
  0xea   :  { %650 = vperm.xlu2 %1501, %v645_v19  }
  0xeb   :  { %643 = vperm.xlu0 %1500, %v638_v16  }
  0xf0   :  { %1503 = vset.pattern.permute.xlu1 %v1634_v18 }
  0xf2   :  { %671 = vperm.xlu2 %1501, %v666_v28  }
  0xf3   :  { %664 = vperm.xlu0 %1500, %v659_v27  }
  0xfa   :  { %v125_v34 = vpop.xlane.xlu1 %124  ;;  %1505 = vset.pattern.permute.xlu2 %v1634_v18 }
  0xfb   :  { %v143_v35 = vmul.f32 0.00390625, %v125_v34  ;;  %685 = vperm.xlu0 %1500, %v680_v31  }
  0xfd   :  { %1514 = vrsqrt.f32 %v143_v35  ;;  %vm180_vm0 = vcmp.eq.f32.partialorder %v143_v35, inf  ;;  %v183_v61 = vand.u32 2147483648, %v143_v35  ;;  %vm182_vm1 = vcmp.eq.f32.partialorder %v143_v35, 0.0 }
 0x102   :  { %v134_v37 = vpop.xlane.xlu1 %133  ;;  %v122_v38 = vpop.xlane.xlu0 %121 }
 0x103   :  { %v1515_v39 = vpop.eup %1514  ;;  %v1853_v24 = vmul.f32 0.00390625, %v134_v37  ;;  %v142_v25 = vmul.f32 0.00390625, %v122_v38  ;;  %1504 = vset.pattern.permute.xlu0 %v1634_v18 }
 0x104   :  { %v174_v40 = vmul.f32 %v1515_v39, %v143_v35 }
 0x105   :  { %1516 = vrsqrt.f32 %v1853_v24  ;;  %v119_v41 = vpop.xlane.xlu2 %118  ;;  %vm168_vm2 = vcmp.eq.f32.partialorder %v142_v25, inf  ;;  %vm170_vm3 = vcmp.eq.f32.partialorder %v142_v25, 0.0  ;;  %vm216_vm7 = vcmp.eq.f32.partialorder %v1853_v24, inf }
 0x106   :  { %1518 = vrsqrt.f32 %v142_v25  ;;  %v175_v42 = vmul.f32 %v1515_v39, %v174_v40  ;;  %v1857_v22 = vmul.f32 0.00390625, %v119_v41  ;;  %vm218_vm9 = vcmp.eq.f32.partialorder %v1853_v24, 0.0 }
 0x108   :  { %v176_v23 = vmul.f32 0.5, %v175_v42  ;;  %1520 = vrsqrt.f32 %v1857_v22  ;;  %vm156_vm4 = vcmp.eq.f32.partialorder %v1857_v22, inf  ;;  %vm158_vm5 = vcmp.eq.f32.partialorder %v1857_v22, 0.0 }
 0x10a   :  { %v131_v44 = vpop.xlane.xlu0 %130  ;;  %v177_v45 = vsub.f32 1.5, %v176_v23 }
 0x10b   :  { %v1517_v47 = vpop.eup %1516  ;;  %v1860_v48 = vmul.f32 0.00390625, %v131_v44 }
 0x10c   :  { %v1519_v49 = vpop.eup %1518  ;;  %v178_v50 = vmul.f32 %v1515_v39, %v177_v45  ;;  %v210_v52 = vmul.f32 %v1517_v47, %v1853_v24 }
 0x10d   :  { %1522 = vrsqrt.f32 %v1860_v48  ;;  %v162_v53 = vmul.f32 %v1519_v49, %v142_v25  ;;  %v128_v33 = vpop.xlane.xlu2 %127  ;;  %vm204_vm10 = vcmp.eq.f32.partialorder %v1860_v48, inf  ;;  %vm206_vm13 = vcmp.eq.f32.partialorder %v1860_v48, 0.0 }
 0x10e   :  { %v179_v56 = vmul.f32 %v178_v50, %v143_v35  ;;  %v1521_v57 = vpop.eup %1520  ;;  %v1864_v58 = vmul.f32 0.00390625, %v128_v33  ;;  %v211_v1 = vmul.f32 %v1517_v47, %v210_v52  ;;  %v171_v52 = vand.u32 2147483648, %v142_v25 }
 0x10f   :  { %v163_v63 = vmul.f32 %v1519_v49, %v162_v53  ;;  %v150_v10 = vmul.f32 %v1521_v57, %v1857_v22 }
 0x110   :  { %v181_v9 = vsel %vm180_vm0, %v143_v35, %v179_v56  ;;  %1524 = vrsqrt.f32 %v1864_v58  ;;  %v212_v37 = vmul.f32 0.5, %v211_v1  ;;  %vm192_vm6 = vcmp.eq.f32.partialorder %v1864_v58, inf }
 0x111   :  { %v184_v11 = vsel %vm182_vm1, %v183_v61, %v181_v9  ;;  %v164_v13 = vmul.f32 0.5, %v163_v63  ;;  %v151_v27 = vmul.f32 %v1521_v57, %v150_v10  ;;  %v159_v10 = vand.u32 2147483648, %v1857_v22 }
 0x112   :  { %v140_v16 = vpop.xlane.xlu0 %139  ;;  %v1869_v19 = vadd.f32 %v184_v11, %v1759_v43  ;;  %v213_v45 = vsub.f32 1.5, %v212_v37  ;;  %vm194_vm8 = vcmp.eq.f32.partialorder %v1864_v58, 0.0  ;;  %vm398_vm0 = vcmask 130112  }
 0x113   :  { %v1523_v28 = vpop.eup %1522  ;;  %v1871_v31 = vmul.f32 0.00390625, %v140_v16  ;;  %v165_v34 = vsub.f32 1.5, %v164_v13  ;;  %v152_v35 = vmul.f32 0.5, %v151_v27  ;;  %vm402_vm1 = vcmask 195712  }
 0x114   :  { %v315_v38 = vmul.f32 %v1815_v55, %v1869_v19  ;;  %v198_v39 = vmul.f32 %v1523_v28, %v1860_v48  ;;  %v214_v11 = vmul.f32 %v1517_v47, %v213_v45  ;;  %v195_v45 = vand.u32 2147483648, %v1864_v58 }
 0x115   :  { %1526 = vrsqrt.f32 %v1871_v31  ;;  %v166_v40 = vmul.f32 %v1519_v49, %v165_v34  ;;  %v137_v41 = vpop.xlane.xlu2 %136  ;;  %v153_v42 = vsub.f32 1.5, %v152_v35  ;;  %vm240_vm14 = vcmp.eq.f32.partialorder %v1871_v31, inf }
 0x116   :  { %352 = vperm.xlu2 %1505, %v315_v38   ;;  %v1525_v43 = vpop.eup %1524  ;;  %v1877_v23 = vmul.f32 0.00390625, %v137_v41  ;;  %v199_v50 = vmul.f32 %v1523_v28, %v198_v39  ;;  %v215_v35 = vmul.f32 %v214_v11, %v1853_v24  ;;  %vm242_vm15 = vcmp.eq.f32.partialorder %v1871_v31, 0.0 }
 0x117   :  { %v167_v44 = vmul.f32 %v166_v40, %v142_v25  ;;  %v154_v53 = vmul.f32 %v1521_v57, %v153_v42  ;;  %v186_v33 = vmul.f32 %v1525_v43, %v1864_v58 }
 0x118   :  { %1528 = vrsqrt.f32 %v1877_v23  ;;  %v200_v57 = vmul.f32 0.5, %v199_v50  ;;  %v217_v50 = vsel %vm216_vm7, %v1853_v24, %v215_v35  ;;  %vm228_vm11 = vcmp.eq.f32.partialorder %v1877_v23, inf }
 0x119   :  { %v169_v56 = vsel %vm168_vm2, %v142_v25, %v167_v44  ;;  %v155_v49 = vmul.f32 %v154_v53, %v1857_v22  ;;  %v187_v63 = vmul.f32 %v1525_v43, %v186_v33  ;;  %vm230_vm12 = vcmp.eq.f32.partialorder %v1877_v23, 0.0 }
 0x11a   :  { %v172_v61 = vsel %vm170_vm3, %v171_v52, %v169_v56  ;;  %v201_v47 = vsub.f32 1.5, %v200_v57  ;;  %vm406_vm2 = vcmask 261312   ;;  %vm429_vm3 = vcmask 1041409  }
 0x11b   :  { %v1527_v1 = vpop.eup %1526  ;;  %v1884_v9 = vadd.f32 %v172_v61, %v1769_v54  ;;  %v157_v13 = vsel %vm156_vm4, %v1857_v22, %v155_v49  ;;  %v188_v16 = vmul.f32 0.5, %v187_v63  ;;  %v319_v61 = vmul.f32 %v1837_v21, %v1869_v19 }
 0x11c   :  { %v234_v25 = vmul.f32 %v1527_v1, %v1871_v31  ;;  %v160_v34 = vsel %vm158_vm5, %v159_v10, %v157_v13  ;;  %v202_v52 = vmul.f32 %v1523_v28, %v201_v47  ;;  %vm434_vm4 = vcmask 254976  }
 0x11d   :  { %v314_v27 = vmul.f32 %v1824_v7, %v1884_v9  ;;  %v245_v37 = vadd.f32 %v160_v34, %v1765_v46  ;;  %v189_v38 = vsub.f32 1.5, %v188_v16  ;;  %vm1104_vm5 = vcmask 1042434  }
 0x11e   :  { %v1529_v54 = vpop.eup %1528  ;;  %v235_v39 = vmul.f32 %v1527_v1, %v234_v25  ;;  %v203_v28 = vmul.f32 %v202_v52, %v1860_v48  ;;  %vm1108_vm7 = vcmask 1044484  }
 0x11f   :  { %349 = vperm.xlu0 %1504, %v314_v27   ;;  %v313_v40 = vmul.f32 %v1822_v6, %v245_v37  ;;  %v317_v22 = vmul.f32 %v1828_v12, %v245_v37  ;;  %v190_v41 = vmul.f32 %v1525_v43, %v189_v38  ;;  %v222_v42 = vmul.f32 %v1529_v54, %v1877_v23 }
 0x120   :  { %v236_v53 = vmul.f32 0.5, %v235_v39  ;;  %v219_v43 = vand.u32 2147483648, %v1853_v24  ;;  %v205_v24 = vsel %vm204_vm10, %v1860_v48, %v203_v28  ;;  %v207_v37 = vand.u32 2147483648, %v1860_v48 }
 0x121   :  { %346 = vperm.xlu1 %1503, %v313_v40   ;;  %358 = vperm.xlu2 %1505, %v317_v22   ;;  %v191_v44 = vmul.f32 %v190_v41, %v1864_v58  ;;  %v223_v46 = vmul.f32 %v1529_v54, %v222_v42  ;;  %v243_v48 = vand.u32 2147483648, %v1871_v31  ;;  %v1941_v42 = vpop.permute.xlu1 %531  ;;  %vm1114_vm10 = vcmask 1047559  }
 0x122   :  { %v220_v10 = vsel %vm218_vm9, %v219_v43, %v217_v50  ;;  %v237_v57 = vsub.f32 1.5, %v236_v53  ;;  %v208_v35 = vsel %vm206_vm13, %v207_v37, %v205_v24  ;;  %vm1112_vm9 = vcmask 1046534  }
 0x123   :  { %v193_v33 = vsel %vm192_vm6, %v1864_v58, %v191_v44  ;;  %v224_v56 = vmul.f32 0.5, %v223_v46  ;;  %v250_v25 = vadd.f32 %v220_v10, %v1767_v51  ;;  %vm1106_vm6 = vcmask 1043459  }
 0x124   :  { %v196_v49 = vsel %vm194_vm8, %v195_v45, %v193_v33  ;;  %v238_v27 = vmul.f32 %v1527_v1, %v237_v57  ;;  %v318_v1 = vmul.f32 %v1839_v26, %v1884_v9  ;;  %vm1110_vm8 = vcmask 1045509  }
 0x125   :  { %v248_v63 = vadd.f32 %v196_v49, %v1785_v62  ;;  %v225_v11 = vsub.f32 1.5, %v224_v56  ;;  %v231_v62 = vand.u32 2147483648, %v1877_v23  ;;  %v322_v51 = vmul.f32 %v1824_v7, %v250_v25 }
 0x126   :  { %v239_v47 = vmul.f32 %v238_v27, %v1871_v31  ;;  %v249_v7 = vadd.f32 %v208_v35, %v1779_v59  ;;  %v326_v9 = vmul.f32 %v1839_v26, %v250_v25 }
 0x127   :  { %364 = vperm.xlu0 %1504, %v319_v61   ;;  %v316_v13 = vmul.f32 %v1833_v14, %v248_v63  ;;  %v320_v58 = vmul.f32 %v1845_v17, %v248_v63  ;;  %v226_v16 = vmul.f32 %v1529_v54, %v225_v11 }
 0x128   :  { %v325_v40 = vmul.f32 %v1828_v12, %v249_v7  ;;  %v321_v22 = vmul.f32 %v1822_v6, %v249_v7  ;;  %v1945_v12 = vpop.permute.xlu2 %524 }
 0x129   :  { %355 = vperm.xlu1 %1503, %v316_v13   ;;  %367 = vperm.xlu2 %1505, %v320_v58   ;;  %v227_v19 = vmul.f32 %v226_v16, %v1877_v23  ;;  %v1949_v26 = vpop.permute.xlu1 %552 }
 0x12b   :  { %v229_v34 = vsel %vm228_vm11, %v1877_v23, %v227_v19  ;;  %v1929_v23 = vpop.permute.xlu0 %510  ;;  %vm1173_vm11 = vcmask 15360  }
 0x12c   :  { %v232_v38 = vsel %vm230_vm12, %v231_v62, %v229_v34  ;;  %v1995_v34 = vand.u32 127, %v256_v0 }
 0x12d   :  { %v251_v54 = vadd.f32 %v232_v38, %v1797_v29  ;;  %v241_v29 = vsel %vm240_vm14, %v1871_v31, %v239_v47 }
 0x12e   :  { %v404_v35 = vadd.s32 4294967272, %v1995_v34 }
 0x12f   :  { %373 = vperm.xlu0 %1504, %v322_v51   ;;  %v323_v39 = vmul.f32 %v1815_v55, %v251_v54  ;;  %v244_v55 = vsel %vm242_vm15, %v243_v48, %v241_v29  ;;  %v396_v51 = vadd.s32 4294967288, %v1995_v34 }
 0x130   :  { %v252_v41 = vadd.f32 %v244_v55, %v1795_v20  ;;  %v327_v20 = vmul.f32 %v1837_v21, %v251_v54  ;;  %v1952_v6 = vpop.permute.xlu2 %545  ;;  %v400_v54 = vadd.s32 4294967280, %v1995_v34 }
 0x131   :  { %376 = vperm.xlu2 %1505, %v323_v39   ;;  %361 = vperm.xlu1 %1503, %v318_v1   ;;  %v1956_v50 = vpop.permute.xlu1 %573 }
 0x132   :  { %v328_v44 = vmul.f32 %v1845_v17, %v252_v41  ;;  %v324_v31 = vmul.f32 %v1833_v14, %v252_v41 }
 0x133   :  { %v1939_v59 = vpop.permute.xlu0 %517 }
 0x137   :  { %382 = vperm.xlu0 %1504, %v325_v40  }
 0x138   :  { %v1958_v17 = vpop.permute.xlu2 %566 }
 0x139   :  { %385 = vperm.xlu2 %1505, %v326_v9   ;;  %370 = vperm.xlu1 %1503, %v321_v22   ;;  %v1962_v14 = vpop.permute.xlu1 %594 }
 0x13b   :  { %v1947_v46 = vpop.permute.xlu0 %538 }
 0x13f   :  { %391 = vperm.xlu0 %1504, %v328_v44  }
 0x140   :  { %v1964_v53 = vpop.permute.xlu2 %587 }
 0x141   :  { %379 = vperm.xlu1 %1503, %v324_v31   ;;  %v1968_v43 = vpop.permute.xlu1 %615 }
 0x143   :  { %v1954_v45 = vpop.permute.xlu0 %559 }
 0x148   :  { %v1970_v21 = vpop.permute.xlu2 %608 }
 0x149   :  { %388 = vperm.xlu1 %1503, %v327_v20   ;;  %v1974_v61 = vpop.permute.xlu1 %636 }
 0x14b   :  { %v1960_v52 = vpop.permute.xlu0 %580 }
 0x150   :  { %v1976_v49 = vpop.permute.xlu2 %629 }
 0x151   :  { %v1980_v10 = vpop.permute.xlu1 %657 }
 0x153   :  { %v1966_v33 = vpop.permute.xlu0 %601 }
 0x158   :  { %v1982_v11 = vpop.permute.xlu2 %650 }
 0x159   :  { %v1986_v57 = vpop.permute.xlu1 %678 }
 0x15b   :  { %v1972_v56 = vpop.permute.xlu0 %622 }
 0x160   :  { %v1988_v13 = vpop.permute.xlu2 %671 }
 0x161   :  { %v1992_v16 = vpop.permute.xlu1 %1205 }
 0x163   :  { %v1978_v63 = vpop.permute.xlu0 %643 }
 0x16b   :  { %v1984_v28 = vpop.permute.xlu0 %664 }
 0x170   :  { %v353_v25 = vpop.permute.xlu2 %352 }
 0x171   :  { %v401_v40 = vperm.slane %v353_v25, %v400_v54 }
 0x173   :  { %v1990_v58 = vpop.permute.xlu0 %685 }
 0x17b   :  { %v359_v24 = vpop.permute.xlu2 %358 }
 0x17c   :  { %v408_v7 = vperm.slane %v359_v24, %v1995_v34 }
 0x183   :  { %v368_v39 = vpop.permute.xlu2 %367 }
 0x184   :  { %v413_v9 = vperm.slane %v368_v39, %v404_v35 }
 0x191   :  { %v350_v19 = vpop.permute.xlu0 %349 }
 0x192   :  { %v397_v47 = vperm.slane %v350_v19, %v396_v51 }
 0x193   :  { %v347_v62 = vpop.permute.xlu1 %346 }
 0x194   :  { %v395_v38 = vperm.slane %v347_v62, %v1995_v34 }
 0x196   :  { %v399_v48 = vsel %vm398_vm0, %v397_v47, %v395_v38 }
 0x197   :  { %v403_v44 = vsel %vm402_vm1, %v401_v40, %v399_v48 }
 0x199   :  { %v365_v37 = vpop.permute.xlu0 %364 }
 0x19a   :  { %v411_v55 = vperm.slane %v365_v37, %v400_v54 }
 0x19b   :  { %v356_v27 = vpop.permute.xlu1 %355 }
 0x19c   :  { %v405_v0 = vperm.slane %v356_v27, %v404_v35  ;;  %v377_v27 = vpop.permute.xlu2 %376 }
 0x19e   :  { %v407_v20 = vsel %vm406_vm2, %v405_v0, %v403_v44 }
 0x1a1   :  { %v374_v22 = vpop.permute.xlu0 %373 }
 0x1a3   :  { %v362_v1 = vpop.permute.xlu1 %361 }
 0x1a4   :  { %v409_v29 = vperm.slane %v362_v1, %v396_v51  ;;  %v386_v39 = vpop.permute.xlu2 %385  ;;  %v416_v1 = vperm.slane %v374_v22, %v396_v51 }
 0x1a6   :  { %v410_v41 = vsel %vm398_vm0, %v409_v29, %v408_v7  ;;  %v423_v29 = vperm.slane %v386_v39, %v396_v51 }
 0x1a7   :  { %v412_v31 = vsel %vm402_vm1, %v411_v55, %v410_v41 }
 0x1a8   :  { %v414_v19 = vsel %vm406_vm2, %v413_v9, %v412_v31  ;;  %v418_v9 = vperm.slane %v377_v27, %v400_v54 }
 0x1a9   :  { %v430_v62 = vsel %vm429_vm3, %v414_v19, %v407_v20  ;;  %v383_v37 = vpop.permute.xlu0 %382 }
 0x1aa   :  { %v435_v25 = vsel %vm434_vm4, %v430_v62, 0.0  ;;  %v422_v7 = vperm.slane %v383_v37, %v1995_v34 }
 0x1ab   :  { %v371_v24 = vpop.permute.xlu1 %370  ;;  %436 = vadd.xlane.f32.xlu2 %v435_v25 }
 0x1ac   :  { %v415_v47 = vperm.slane %v371_v24, %v1995_v34  ;;  %v424_v44 = vsel %vm398_vm0, %v423_v29, %v422_v7 }
 0x1ae   :  { %v417_v0 = vsel %vm398_vm0, %v416_v1, %v415_v47 }
 0x1af   :  { %v419_v19 = vsel %vm402_vm1, %v418_v9, %v417_v0 }
 0x1b1   :  { %v392_v48 = vpop.permute.xlu0 %391 }
 0x1b2   :  { %v427_v31 = vperm.slane %v392_v48, %v404_v35 }
 0x1b3   :  { %v380_v38 = vpop.permute.xlu1 %379 }
 0x1b4   :  { %v420_v40 = vperm.slane %v380_v38, %v404_v35 }
 0x1b6   :  { %v421_v62 = vsel %vm406_vm2, %v420_v40, %v419_v19 }
 0x1bb   :  { %v389_v55 = vpop.permute.xlu1 %388 }
 0x1bc   :  { %v425_v41 = vperm.slane %v389_v55, %v400_v54 }
 0x1be   :  { %v426_v20 = vsel %vm402_vm1, %v425_v41, %v424_v44 }
 0x1bf   :  { %v428_v22 = vsel %vm406_vm2, %v427_v31, %v426_v20 }
 0x1c0   :  { %v431_v25 = vsel %vm429_vm3, %v428_v22, %v421_v62 }
 0x1c1   :  { %v438_v51 = vsel %vm434_vm4, %v431_v25, 0.0 }
 0x1c2   :  { %439 = vadd.xlane.f32.xlu1 %v438_v51 }
 0x21e   :  { %v437_v24 = vpop.xlane.xlu2 %436 }
 0x21f   :  { %v451_v27 = vadd.f32 %v1820_v60, %v437_v24 }
 0x221   :  { %v2021_v54 = vmax.f32 %v451_v27, 0.0 }
 0x223   :  { %v719_v35 = vmul.f32 %v1826_v8, %v2021_v54  ;;  %v720_v37 = vmul.f32 %v1835_v15, %v2021_v54  ;;  %v721_v38 = vmul.f32 %v1841_v4, %v2021_v54  ;;  %v726_v47 = vmul.f32 %v1939_v59, %v2021_v54 }
 0x224   :  { %v722_v39 = vmul.f32 %v1851_v36, %v2021_v54  ;;  %v723_v1 = vmul.f32 %v1843_v5, %v2021_v54  ;;  %v729_v7 = vmul.f32 %v1947_v46, %v2021_v54  ;;  %v724_v48 = vmul.f32 %v1848_v32, %v2021_v54 }
 0x225   :  { %854 = vperm.xlu0 %1504, %v721_v38   ;;  %848 = vperm.xlu2 %1505, %v719_v35   ;;  %v725_v29 = vmul.f32 %v1929_v23, %v2021_v54  ;;  %v732_v0 = vmul.f32 %v1954_v45, %v2021_v54  ;;  %v727_v40 = vmul.f32 %v1945_v12, %v2021_v54 }
 0x226   :  { %851 = vperm.xlu1 %1503, %v720_v37   ;;  %v728_v55 = vmul.f32 %v1941_v42, %v2021_v54  ;;  %v735_v9 = vmul.f32 %v1960_v52, %v2021_v54  ;;  %v730_v41 = vmul.f32 %v1952_v6, %v2021_v54  ;;  %v731_v44 = vmul.f32 %v1949_v26, %v2021_v54 }
 0x227   :  { %v738_v31 = vmul.f32 %v1966_v33, %v2021_v54  ;;  %v733_v20 = vmul.f32 %v1958_v17, %v2021_v54  ;;  %v734_v19 = vmul.f32 %v1956_v50, %v2021_v54  ;;  %v741_v62 = vmul.f32 %v1972_v56, %v2021_v54 }
 0x228   :  { %v736_v22 = vmul.f32 %v1964_v53, %v2021_v54  ;;  %v737_v25 = vmul.f32 %v1962_v14, %v2021_v54  ;;  %v744_v51 = vmul.f32 %v1978_v63, %v2021_v54  ;;  %v739_v24 = vmul.f32 %v1970_v21, %v2021_v54 }
 0x229   :  { %v740_v27 = vmul.f32 %v1968_v43, %v2021_v54  ;;  %v747_v35 = vmul.f32 %v1984_v28, %v2021_v54  ;;  %v742_v37 = vmul.f32 %v1976_v49, %v2021_v54  ;;  %v743_v38 = vmul.f32 %v1974_v61, %v2021_v54 }
 0x22d   :  { %869 = vperm.xlu0 %1504, %v726_v47   ;;  %857 = vperm.xlu2 %1505, %v722_v39   ;;  %v750_v39 = vmul.f32 %v1990_v58, %v2021_v54 }
 0x22e   :  { %860 = vperm.xlu1 %1503, %v723_v1  }
 0x235   :  { %878 = vperm.xlu0 %1504, %v729_v7   ;;  %863 = vperm.xlu2 %1505, %v724_v48   ;;  %v440_v47 = vpop.xlane.xlu1 %439  ;;  %v745_v7 = vmul.f32 %v1982_v11, %v2021_v54  ;;  %v746_v48 = vmul.f32 %v1980_v10, %v2021_v54 }
 0x236   :  { %866 = vperm.xlu1 %1503, %v725_v29   ;;  %v452_v1 = vadd.f32 %v1820_v60, %v440_v47  ;;  %v749_v60 = vmul.f32 %v1986_v57, %v2021_v54 }
 0x238   :  { %v2084_v29 = vmax.f32 %v452_v1, 0.0 }
 0x23a   :  { %v766_v47 = vmul.f32 %v1956_v50, %v2084_v29  ;;  %v770_v50 = vmul.f32 %v1966_v33, %v2084_v29 }
 0x23d   :  { %887 = vperm.xlu0 %1504, %v732_v0   ;;  %872 = vperm.xlu2 %1505, %v727_v40   ;;  %v753_v0 = vmul.f32 %v1841_v4, %v2084_v29  ;;  %v748_v40 = vmul.f32 %v1988_v13, %v2021_v54  ;;  %v754_v54 = vmul.f32 %v1851_v36, %v2084_v29 }
 0x23e   :  { %875 = vperm.xlu1 %1503, %v728_v55   ;;  %v756_v55 = vmul.f32 %v1848_v32, %v2084_v29  ;;  %v757_v32 = vmul.f32 %v1929_v23, %v2084_v29 }
 0x245   :  { %896 = vperm.xlu0 %1504, %v735_v9   ;;  %881 = vperm.xlu2 %1505, %v730_v41   ;;  %v751_v9 = vmul.f32 %v1826_v8, %v2084_v29  ;;  %v752_v41 = vmul.f32 %v1835_v15, %v2084_v29  ;;  %v762_v15 = vmul.f32 %v1952_v6, %v2084_v29 }
 0x246   :  { %884 = vperm.xlu1 %1503, %v731_v44   ;;  %v759_v44 = vmul.f32 %v1945_v12, %v2084_v29  ;;  %v760_v12 = vmul.f32 %v1941_v42, %v2084_v29  ;;  %v761_v6 = vmul.f32 %v1947_v46, %v2084_v29  ;;  %v768_v42 = vmul.f32 %v1964_v53, %v2084_v29 }
 0x247   :  { %v763_v46 = vmul.f32 %v1949_v26, %v2084_v29 }
 0x24d   :  { %905 = vperm.xlu0 %1504, %v738_v31   ;;  %890 = vperm.xlu2 %1505, %v733_v20   ;;  %v755_v31 = vmul.f32 %v1843_v5, %v2084_v29  ;;  %v758_v20 = vmul.f32 %v1939_v59, %v2084_v29  ;;  %v765_v5 = vmul.f32 %v1958_v17, %v2084_v29 }
 0x24e   :  { %893 = vperm.xlu1 %1503, %v734_v19  }
 0x255   :  { %914 = vperm.xlu0 %1504, %v741_v62   ;;  %899 = vperm.xlu2 %1505, %v736_v22  }
 0x256   :  { %902 = vperm.xlu1 %1503, %v737_v25  }
 0x25d   :  { %923 = vperm.xlu0 %1504, %v744_v51   ;;  %908 = vperm.xlu2 %1505, %v739_v24   ;;  %v764_v24 = vmul.f32 %v1954_v45, %v2084_v29  ;;  %v767_v45 = vmul.f32 %v1960_v52, %v2084_v29 }
 0x25e   :  { %911 = vperm.xlu1 %1503, %v740_v27  }
 0x265   :  { %932 = vperm.xlu0 %1504, %v747_v35   ;;  %917 = vperm.xlu2 %1505, %v742_v37  }
 0x266   :  { %920 = vperm.xlu1 %1503, %v743_v38   ;;  %v771_v38 = vmul.f32 %v1970_v21, %v2084_v29  ;;  %v769_v21 = vmul.f32 %v1962_v14, %v2084_v29  ;;  %v773_v14 = vmul.f32 %v1972_v56, %v2084_v29 }
 0x26d   :  { %941 = vperm.xlu0 %1504, %v750_v39   ;;  %926 = vperm.xlu2 %1505, %v745_v7  }
 0x26e   :  { %929 = vperm.xlu1 %1503, %v746_v48   ;;  %v774_v48 = vmul.f32 %v1976_v49, %v2084_v29  ;;  %v772_v49 = vmul.f32 %v1968_v43, %v2084_v29  ;;  %v776_v43 = vmul.f32 %v1978_v63, %v2084_v29 }
 0x275   :  { %950 = vperm.xlu0 %1504, %v753_v0   ;;  %935 = vperm.xlu2 %1505, %v748_v40  }
 0x276   :  { %938 = vperm.xlu1 %1503, %v749_v60   ;;  %v777_v60 = vmul.f32 %v1982_v11, %v2084_v29  ;;  %v775_v11 = vmul.f32 %v1974_v61, %v2084_v29 }
 0x27d   :  { %959 = vperm.xlu0 %1504, %v756_v55   ;;  %944 = vperm.xlu2 %1505, %v751_v9  }
 0x27e   :  { %947 = vperm.xlu1 %1503, %v752_v41   ;;  %v780_v41 = vmul.f32 %v1988_v13, %v2084_v29  ;;  %v779_v13 = vmul.f32 %v1984_v28, %v2084_v29 }
 0x27f   :  { %v849_v4 = vpop.permute.xlu2 %848 }
 0x280   :  { %v1039_v22 = vperm.slane %v849_v4, %v1995_v34 }
 0x285   :  { %968 = vperm.xlu0 %1504, %v759_v44   ;;  %953 = vperm.xlu2 %1505, %v754_v54   ;;  %v778_v54 = vmul.f32 %v1980_v10, %v2084_v29 }
 0x286   :  { %956 = vperm.xlu1 %1503, %v755_v31  }
 0x287   :  { %v858_v8 = vpop.permute.xlu2 %857 }
 0x288   :  { %v1042_v17 = vperm.slane %v858_v8, %v1995_v34  ;;  %v781_v8 = vmul.f32 %v1986_v57, %v2084_v29 }
 0x28d   :  { %977 = vperm.xlu0 %1504, %v762_v15   ;;  %962 = vperm.xlu2 %1505, %v757_v32   ;;  %v782_v15 = vmul.f32 %v1990_v58, %v2084_v29 }
 0x28e   :  { %965 = vperm.xlu1 %1503, %v758_v20  }
 0x28f   :  { %v2110_v36 = vpop.permute.xlu2 %863 }
 0x290   :  { %v1044_v29 = vperm.slane %v2110_v36, %v1995_v34 }
 0x295   :  { %986 = vperm.xlu0 %1504, %v765_v5   ;;  %971 = vperm.xlu2 %1505, %v760_v12  }
 0x296   :  { %974 = vperm.xlu1 %1503, %v761_v6  }
 0x297   :  { %v855_v23 = vpop.permute.xlu0 %854  ;;  %v2118_v19 = vpop.permute.xlu2 %872 }
 0x298   :  { %v852_v59 = vpop.permute.xlu1 %851  ;;  %v1041_v62 = vperm.slane %v855_v23, %v1995_v34 }
 0x299   :  { %v1040_v25 = vperm.slane %v852_v59, %v1995_v34 }
 0x29b   :  { %v1103_v51 = vsel %vm429_vm3, %v1040_v25, %v1039_v22 }
 0x29c   :  { %v1105_v27 = vsel %vm1104_vm5, %v1041_v62, %v1103_v51 }
 0x29d   :  { %995 = vperm.xlu0 %1504, %v768_v42   ;;  %980 = vperm.xlu2 %1505, %v763_v46   ;;  %v2133_v35 = vsel %vm1106_vm6, %v1042_v17, %v1105_v27  ;;  %v1047_v42 = vperm.slane %v2118_v19, %v1995_v34 }
 0x29e   :  { %983 = vperm.xlu1 %1503, %v764_v24  }
 0x29f   :  { %v2135_v53 = vpop.permute.xlu0 %869  ;;  %v2137_v37 = vpop.permute.xlu2 %881 }
 0x2a0   :  { %v861_v26 = vpop.permute.xlu1 %860  ;;  %v1046_v22 = vperm.slane %v2135_v53, %v1995_v34 }
 0x2a1   :  { %v1043_v28 = vperm.slane %v861_v26, %v1995_v34 }
 0x2a3   :  { %v1109_v57 = vsel %vm1108_vm7, %v1043_v28, %v2133_v35 }
 0x2a4   :  { %v1111_v23 = vsel %vm1110_vm8, %v1044_v29, %v1109_v57 }
 0x2a5   :  { %1004 = vperm.xlu0 %1504, %v771_v38   ;;  %989 = vperm.xlu2 %1505, %v766_v47  }
 0x2a6   :  { %992 = vperm.xlu1 %1503, %v767_v45  }
 0x2a7   :  { %v2145_v39 = vpop.permute.xlu0 %878  ;;  %v2147_v1 = vpop.permute.xlu2 %890 }
 0x2a8   :  { %v867_v7 = vpop.permute.xlu1 %866  ;;  %v1049_v19 = vperm.slane %v2145_v39, %v1995_v34 }
 0x2a9   :  { %v1045_v58 = vperm.slane %v867_v7, %v1995_v34 }
 0x2ab   :  { %v1113_v62 = vsel %vm1112_vm9, %v1045_v58, %v1111_v23 }
 0x2ac   :  { %v1115_v24 = vsel %vm1114_vm10, %v1046_v22, %v1113_v62 }
 0x2ad   :  { %1013 = vperm.xlu0 %1504, %v774_v48   ;;  %998 = vperm.xlu2 %1505, %v769_v21   ;;  %v1174_v7 = vsel %vm1173_vm11, %v1115_v24, 0.0 }
 0x2ae   :  { %1001 = vperm.xlu1 %1503, %v770_v50  }
 0x2af   :  { %v2155_v52 = vpop.permute.xlu0 %887  ;;  %v2157_v0 = vpop.permute.xlu2 %899 }
 0x2b0   :  { %v2159_v40 = vpop.permute.xlu1 %875  ;;  %v1056_v38 = vperm.slane %v2157_v0, %v1995_v34 }
 0x2b1   :  { %v1048_v59 = vperm.slane %v2159_v40, %v1995_v34  ;;  %v1050_v40 = vperm.slane %v2137_v37, %v1995_v34 }
 0x2b3   :  { %v1116_v27 = vsel %vm429_vm3, %v1048_v59, %v1047_v42 }
 0x2b4   :  { %v1117_v48 = vsel %vm1104_vm5, %v1049_v19, %v1116_v27 }
 0x2b5   :  { %1022 = vperm.xlu0 %1504, %v777_v60   ;;  %1007 = vperm.xlu2 %1505, %v772_v49  }
 0x2b6   :  { %1010 = vperm.xlu1 %1503, %v773_v14  }
 0x2b7   :  { %v2167_v33 = vpop.permute.xlu0 %896  ;;  %v2169_v55 = vpop.permute.xlu2 %908 }
 0x2b8   :  { %v2171_v9 = vpop.permute.xlu1 %884  ;;  %v1055_v51 = vperm.slane %v2167_v33, %v1995_v34 }
 0x2b9   :  { %v1051_v39 = vperm.slane %v2171_v9, %v1995_v34 }
 0x2ba   :  { %v1123_v21 = vsel %vm429_vm3, %v1056_v38, %v1055_v51 }
 0x2bd   :  { %1031 = vperm.xlu0 %1504, %v780_v41   ;;  %1016 = vperm.xlu2 %1505, %v775_v11   ;;  %v1118_v41 = vsel %vm1106_vm6, %v1050_v40, %v1117_v48 }
 0x2be   :  { %1019 = vperm.xlu1 %1503, %v776_v43  }
 0x2bf   :  { %v2179_v56 = vpop.permute.xlu0 %905  ;;  %v2181_v4 = vpop.permute.xlu2 %917 }
 0x2c0   :  { %v2183_v44 = vpop.permute.xlu1 %893  ;;  %v1058_v49 = vperm.slane %v2179_v56, %v1995_v34  ;;  %v1119_v56 = vsel %vm1108_vm7, %v1051_v39, %v1118_v41 }
 0x2c5   :  { %1506 = vset.pattern.permute.xlu0 %v1676_v2  ;;  %1025 = vperm.xlu2 %1505, %v778_v54  }
 0x2c6   :  { %1028 = vperm.xlu1 %1503, %v779_v13   ;;  %v1059_v13 = vperm.slane %v2169_v55, %v1995_v34 }
 0x2c7   :  { %v2190_v61 = vpop.permute.xlu0 %914  ;;  %v927_v63 = vpop.permute.xlu2 %926 }
 0x2c8   :  { %v903_v31 = vpop.permute.xlu1 %902  ;;  %v1065_v46 = vperm.slane %v927_v63, %v1995_v34 }
 0x2c9   :  { %v1057_v35 = vperm.slane %v903_v31, %v1995_v34  ;;  %v1052_v31 = vperm.slane %v2155_v52, %v1995_v34  ;;  %v1061_v52 = vperm.slane %v2190_v61, %v1995_v34 }
 0x2cb   :  { %v1124_v0 = vsel %vm1104_vm5, %v1057_v35, %v1123_v21  ;;  %v1120_v28 = vsel %vm1110_vm8, %v1052_v31, %v1119_v56 }
 0x2cc   :  { %v1125_v43 = vsel %vm1106_vm6, %v1058_v49, %v1124_v0 }
 0x2cd   :  { %1034 = vperm.xlu2 %1505, %v781_v8  }
 0x2ce   :  { %1037 = vperm.xlu1 %1503, %v782_v15   ;;  %v1126_v15 = vsel %vm1108_vm7, %v1059_v13, %v1125_v43 }
 0x2cf   :  { %v924_v10 = vpop.permute.xlu0 %923  ;;  %v936_v32 = vpop.permute.xlu2 %935 }
 0x2d0   :  { %v2196_v20 = vpop.permute.xlu1 %911  ;;  %v1068_v14 = vperm.slane %v936_v32, %v1995_v34 }
 0x2d1   :  { %v1060_v37 = vperm.slane %v2196_v20, %v1995_v34  ;;  %v1054_v20 = vperm.slane %v2183_v44, %v1995_v34  ;;  %v1062_v44 = vperm.slane %v2181_v4, %v1995_v34 }
 0x2d5   :  { %1507 = vset.pattern.permute.xlu2 %v1679_v3 }
 0x2d6   :  { %1508 = vset.pattern.permute.xlu1 %v1736_v30  ;;  %v1064_v30 = vperm.slane %v924_v10, %v1995_v34 }
 0x2d7   :  { %v933_v2 = vpop.permute.xlu0 %932  ;;  %v2201_v12 = vpop.permute.xlu2 %944 }
 0x2d8   :  { %v921_v5 = vpop.permute.xlu1 %920  ;;  %v1067_v45 = vperm.slane %v933_v2, %v1995_v34  ;;  %v1127_v2 = vsel %vm1110_vm8, %v1060_v37, %v1126_v15 }
 0x2d9   :  { %v1063_v3 = vperm.slane %v921_v5, %v1995_v34  ;;  %v1053_v5 = vperm.slane %v2147_v1, %v1995_v34 }
 0x2db   :  { %v1130_v25 = vsel %vm429_vm3, %v1064_v30, %v1063_v3  ;;  %v1121_v29 = vsel %vm1112_vm9, %v1053_v5, %v1120_v28  ;;  %v1128_v3 = vsel %vm1112_vm9, %v1061_v52, %v1127_v2 }
 0x2dc   :  { %v1131_v26 = vsel %vm1104_vm5, %v1065_v46, %v1130_v25  ;;  %v1122_v30 = vsel %vm1114_vm10, %v1054_v20, %v1121_v29  ;;  %v1129_v1 = vsel %vm1114_vm10, %v1062_v44, %v1128_v3 }
 0x2dd   :  { %v1177_v61 = vsel %vm1173_vm11, %v1122_v30, 0.0  ;;  %v1180_v25 = vsel %vm1173_vm11, %v1129_v1, 0.0 }
 0x2df   :  { %v942_v6 = vpop.permute.xlu0 %941  ;;  %v954_v53 = vpop.permute.xlu2 %953 }
 0x2e0   :  { %v930_v36 = vpop.permute.xlu1 %929  ;;  %v1070_v9 = vperm.slane %v942_v6, %v1995_v34  ;;  %v1071_v6 = vperm.slane %v2201_v12, %v1995_v34  ;;  %v1074_v42 = vperm.slane %v954_v53, %v1995_v34 }
 0x2e1   :  { %v1066_v17 = vperm.slane %v930_v36, %v1995_v34 }
 0x2e3   :  { %v1132_v47 = vsel %vm1106_vm6, %v1066_v17, %v1131_v26 }
 0x2e4   :  { %v1133_v60 = vsel %vm1108_vm7, %v1067_v45, %v1132_v47 }
 0x2e5   :  { %v1134_v54 = vsel %vm1110_vm8, %v1068_v14, %v1133_v60 }
 0x2e7   :  { %1175 = vadd.xlane.f32.xlu0 %v1174_v7  ;;  %v951_v50 = vpop.permute.xlu0 %950  ;;  %v963_v10 = vpop.permute.xlu2 %962 }
 0x2e8   :  { %v939_v33 = vpop.permute.xlu1 %938  ;;  %v1073_v59 = vperm.slane %v951_v50, %v1995_v34  ;;  %v1077_v35 = vperm.slane %v963_v10, %v1995_v34 }
 0x2e9   :  { %v1069_v11 = vperm.slane %v939_v33, %v1995_v34 }
 0x2eb   :  { %v1135_v63 = vsel %vm1112_vm9, %v1069_v11, %v1134_v54 }
 0x2ec   :  { %v1136_v8 = vsel %vm1114_vm10, %v1070_v9, %v1135_v63 }
 0x2ed   :  { %v1183_v32 = vsel %vm1173_vm11, %v1136_v8, 0.0 }
 0x2ef   :  { %1184 = vadd.xlane.f32.xlu0 %v1183_v32  ;;  %v960_v55 = vpop.permute.xlu0 %959  ;;  %v972_v22 = vpop.permute.xlu2 %971 }
 0x2f0   :  { %v948_v57 = vpop.permute.xlu1 %947  ;;  %v1076_v51 = vperm.slane %v960_v55, %v1995_v34  ;;  %v1080_v50 = vperm.slane %v972_v22, %v1995_v34 }
 0x2f1   :  { %v1072_v58 = vperm.slane %v948_v57, %v1995_v34 }
 0x2f3   :  { %v1137_v23 = vsel %vm429_vm3, %v1072_v58, %v1071_v6 }
 0x2f4   :  { %v1138_v4 = vsel %vm1104_vm5, %v1073_v59, %v1137_v23 }
 0x2f5   :  { %v1139_v46 = vsel %vm1106_vm6, %v1074_v42, %v1138_v4  ;;  %v1562_v42 = vld [vmem:[%s2404_s4] ss:$0 sm:$0xff]  ;;  %s1635_s4 = smov [#allocation5]  }
 0x2f6   :  { %1178 = vadd.xlane.f32.xlu2 %v1177_v61  ;;  %s1465_s12 = sshll.u32 %s1635_s4, 4  ;;  %s1466_s12 = int_to_ptr.vmem [resolvable:$true] %s1465_s12 }
 0x2f7   :  { %v969_v62 = vpop.permute.xlu0 %968  ;;  %v981_v19 = vpop.permute.xlu2 %980 }
 0x2f8   :  { %v957_v36 = vpop.permute.xlu1 %956  ;;  %1181 = vadd.xlane.f32.xlu1 %v1180_v25  ;;  %v1079_v7 = vperm.slane %v969_v62, %v1995_v34  ;;  %v1083_v33 = vperm.slane %v981_v19, %v1995_v34 }
 0x2f9   :  { %v1075_v12 = vperm.slane %v957_v36, %v1995_v34 }
 0x2fa   :  { %v1144_v39 = vsel %vm429_vm3, %v1080_v50, %v1079_v7 }
 0x2fb   :  { %v1140_v17 = vsel %vm1108_vm7, %v1075_v12, %v1139_v46 }
 0x2fc   :  { %v1141_v27 = vsel %vm1110_vm8, %v1076_v51, %v1140_v17 }
 0x2fd   :  { %v1142_v47 = vsel %vm1112_vm9, %v1077_v35, %v1141_v27 }
 0x2ff   :  { %v978_v24 = vpop.permute.xlu0 %977  ;;  %v990_v0 = vpop.permute.xlu2 %989 }
 0x300   :  { %v966_v26 = vpop.permute.xlu1 %965  ;;  %v1082_v49 = vperm.slane %v978_v24, %v1995_v34  ;;  %v1086_v54 = vperm.slane %v990_v0, %v1995_v34 }
 0x301   :  { %v1078_v38 = vperm.slane %v966_v26, %v1995_v34 }
 0x303   :  { %v1143_v53 = vsel %vm1114_vm10, %v1078_v38, %v1142_v47 }
 0x304   :  { %v1186_v45 = vsel %vm1173_vm11, %v1143_v53, 0.0 }
 0x305   :  { %1187 = vadd.xlane.f32.xlu2 %v1186_v45 }
 0x307   :  { %v987_v21 = vpop.permute.xlu0 %986  ;;  %v999_v63 = vpop.permute.xlu2 %998 }
 0x308   :  { %v975_v48 = vpop.permute.xlu1 %974  ;;  %v1085_v43 = vperm.slane %v987_v21, %v1995_v34  ;;  %v1089_v5 = vperm.slane %v999_v63, %v1995_v34 }
 0x309   :  { %v1081_v40 = vperm.slane %v975_v48, %v1995_v34 }
 0x30b   :  { %v1145_v60 = vsel %vm1104_vm5, %v1081_v40, %v1144_v39 }
 0x30c   :  { %v1146_v14 = vsel %vm1106_vm6, %v1082_v49, %v1145_v60 }
 0x30d   :  { %v1147_v37 = vsel %vm1108_vm7, %v1083_v33, %v1146_v14 }
 0x30f   :  { %v996_v9 = vpop.permute.xlu0 %995  ;;  %v1008_v2 = vpop.permute.xlu2 %1007 }
 0x310   :  { %v984_v41 = vpop.permute.xlu1 %983  ;;  %v1088_v20 = vperm.slane %v996_v9, %v1995_v34  ;;  %v1092_v30 = vperm.slane %v1008_v2, %v1995_v34 }
 0x311   :  { %v1084_v11 = vperm.slane %v984_v41, %v1995_v34 }
 0x313   :  { %v1148_v13 = vsel %vm1110_vm8, %v1084_v11, %v1147_v37 }
 0x314   :  { %v1149_v56 = vsel %vm1112_vm9, %v1085_v43, %v1148_v13 }
 0x315   :  { %v1150_v31 = vsel %vm1114_vm10, %v1086_v54, %v1149_v56 }
 0x316   :  { %v1189_v8 = vsel %vm1173_vm11, %v1150_v31, 0.0 }
 0x317   :  { %1190 = vadd.xlane.f32.xlu1 %v1189_v8  ;;  %v1005_v32 = vpop.permute.xlu0 %1004  ;;  %v1017_v1 = vpop.permute.xlu2 %1016 }
 0x318   :  { %v993_v15 = vpop.permute.xlu1 %992  ;;  %v1091_v29 = vperm.slane %v1005_v32, %v1995_v34  ;;  %v1095_v46 = vperm.slane %v1017_v1, %v1995_v34 }
 0x319   :  { %v1087_v10 = vperm.slane %v993_v15, %v1995_v34 }
 0x31b   :  { %v1151_v55 = vsel %vm429_vm3, %v1088_v20, %v1087_v10 }
 0x31c   :  { %v1152_v57 = vsel %vm1104_vm5, %v1089_v5, %v1151_v55 }
 0x31f   :  { %v1014_v3 = vpop.permute.xlu0 %1013  ;;  %v1026_v17 = vpop.permute.xlu2 %1025 }
 0x320   :  { %v1002_v28 = vpop.permute.xlu1 %1001  ;;  %v1094_v61 = vperm.slane %v1014_v3, %v1995_v34  ;;  %v1098_v26 = vperm.slane %v1026_v17, %v1995_v34 }
 0x321   :  { %v1090_v52 = vperm.slane %v1002_v28, %v1995_v34 }
 0x323   :  { %v1153_v58 = vsel %vm1106_vm6, %v1090_v52, %v1152_v57 }
 0x324   :  { %v1154_v44 = vsel %vm1108_vm7, %v1091_v29, %v1153_v58 }
 0x325   :  { %v1155_v59 = vsel %vm1110_vm8, %v1092_v30, %v1154_v44 }
 0x327   :  { %v1023_v4 = vpop.permute.xlu0 %1022  ;;  %v1035_v45 = vpop.permute.xlu2 %1034 }
 0x328   :  { %v1011_v6 = vpop.permute.xlu1 %1010  ;;  %v1097_v24 = vperm.slane %v1023_v4, %v1995_v34  ;;  %v1101_v21 = vperm.slane %v1035_v45, %v1995_v34 }
 0x329   :  { %v1093_v23 = vperm.slane %v1011_v6, %v1995_v34 }
 0x32b   :  { %v1156_v62 = vsel %vm1112_vm9, %v1093_v23, %v1155_v59 }
 0x32c   :  { %v1157_v22 = vsel %vm1114_vm10, %v1094_v61, %v1156_v62 }
 0x32d   :  { %v1192_v25 = vsel %vm1173_vm11, %v1157_v22, 0.0 }
 0x32e   :  { %1193 = vadd.xlane.f32.xlu0 %v1192_v25 }
 0x32f   :  { %v1032_v38 = vpop.permute.xlu0 %1031 }
 0x330   :  { %v1020_v36 = vpop.permute.xlu1 %1019  ;;  %1223 = vperm.xlu1 %1508, %v1562_v42   ;;  %v1100_v7 = vperm.slane %v1032_v38, %v1995_v34 }
 0x331   :  { %v1096_v12 = vperm.slane %v1020_v36, %v1995_v34 }
 0x333   :  { %v1158_v51 = vsel %vm429_vm3, %v1096_v12, %v1095_v46 }
 0x334   :  { %v1159_v27 = vsel %vm1104_vm5, %v1097_v24, %v1158_v51 }
 0x335   :  { %v1160_v47 = vsel %vm1106_vm6, %v1098_v26, %v1159_v27 }
 0x338   :  { %v1029_v35 = vpop.permute.xlu1 %1028  ;;  %1510 = vset.pattern.permute.xlu1 %v1634_v18 }
 0x339   :  { %v1099_v19 = vperm.slane %v1029_v35, %v1995_v34 }
 0x33b   :  { %v1161_v53 = vsel %vm1108_vm7, %v1099_v19, %v1160_v47 }
 0x33c   :  { %v1162_v48 = vsel %vm1110_vm8, %v1100_v7, %v1161_v53 }
 0x33d   :  { %v1163_v39 = vsel %vm1112_vm9, %v1101_v21, %v1162_v48 }
 0x340   :  { %v1038_v50 = vpop.permute.xlu1 %1037 }
 0x341   :  { %v1102_v40 = vperm.slane %v1038_v50, %v1995_v34 }
 0x342   :  { %1211 = vperm.xlu0 %1506, %v1562_v42  }
 0x343   :  { %v1164_v0 = vsel %vm1114_vm10, %v1102_v40, %v1163_v39 }
 0x344   :  { %v1195_v60 = vsel %vm1173_vm11, %v1164_v0, 0.0 }
 0x345   :  { %1196 = vadd.xlane.f32.xlu2 %v1195_v60 }
 0x34a   :  { %1511 = vset.pattern.permute.xlu0 %v1634_v18 }
 0x35a   :  { %v1176_v49 = vpop.xlane.xlu0 %1175 }
 0x35b   :  { %v1229_v14 = vadd.f32 %v1992_v16, %v1176_v49 }
 0x35d   :  { %v1480_v33 = vmul.f32 -1.442695, %v1229_v14  ;;  %1217 = vperm.xlu2 %1507, %v1562_v42  }
 0x35f   :  { %1530 = vpow2.f32 %v1480_v33 }
 0x362   :  { %v1185_v1 = vpop.xlane.xlu0 %1184 }
 0x365   :  { %v1531_v41 = vpop.eup %1530  ;;  %1509 = vset.pattern.permute.xlu2 %v1634_v18 }
 0x366   :  { %v1261_v11 = vadd.f32 1.0, %v1531_v41 }
 0x368   :  { %1532 = vrcp.f32 %v1261_v11  ;;  %v1280_v54 = vand.u32 2147483648, %v1261_v11  ;;  %v1278_v56 = vand.u32 2147483647, %v1261_v11  ;;  %vm1274_vm13 = vweird.f32 %v1261_v11 }
 0x369   :  { %v1179_v37 = vpop.xlane.xlu2 %1178 }
 0x36a   :  { %v1281_v31 = vor.u32 1.1754944e-38, %v1280_v54  ;;  %vm1279_vm15 = vcmp.eq.f32.partialorder %v1278_v56, 8.507059e+37 }
 0x36b   :  { %v1182_v30 = vpop.xlane.xlu1 %1181 }
 0x36e   :  { %v1533_v34 = vpop.eup %1532 }
 0x36f   :  { %v1270_v43 = vmul.f32 %v1533_v34, %v1261_v11  ;;  %vm1275_vm12 = vweird.f32 %v1533_v34 }
 0x370   :  { %vm1276_vm14 = vmor %vm1274_vm13, %vm1275_vm12 }
 0x371   :  { %v1271_v9 = vsub.f32 1.0, %v1270_v43 }
 0x373   :  { %v1272_v13 = vmul.f32 %v1533_v34, %v1271_v9 }
 0x375   :  { %v1273_v63 = vadd.f32 %v1533_v34, %v1272_v13 }
 0x377   :  { %v1277_v8 = vsel %vm1276_vm14, %v1533_v34, %v1273_v63 }
 0x378   :  { %v1282_v15 = vsel %vm1279_vm15, %v1281_v31, %v1277_v8  ;;  %v1188_v10 = vpop.xlane.xlu2 %1187 }
 0x379   :  { %1391 = vperm.xlu2 %1509, %v1282_v15   ;;  %v1233_v18 = vadd.f32 %v1992_v16, %v1188_v10  ;;  %v1563_v15 = vld [vmem:[#allocation2] sm:$0xff] }
 0x37b   :  { %v1484_v32 = vmul.f32 -1.442695, %v1233_v18  ;;  %v1564_v18 = vld [vmem:[#allocation2 + $0x8] sm:$0xff] }
 0x37d   :  { %1534 = vpow2.f32 %v1484_v32 }
 0x383   :  { %v1535_v20 = vpop.eup %1534 }
 0x384   :  { %v1265_v2 = vadd.f32 1.0, %v1535_v20 }
 0x386   :  { %1536 = vrcp.f32 %v1265_v2  ;;  %v1340_v52 = vand.u32 2147483648, %v1265_v2  ;;  %v1338_v58 = vand.u32 2147483647, %v1265_v2  ;;  %vm1334_vm1 = vweird.f32 %v1265_v2 }
 0x388   :  { %v1341_v3 = vor.u32 1.1754944e-38, %v1340_v52  ;;  %vm1339_vm3 = vcmp.eq.f32.partialorder %v1338_v58, 8.507059e+37 }
 0x38a   :  { %v1191_v6 = vpop.xlane.xlu1 %1190 }
 0x38c   :  { %v1537_v55 = vpop.eup %1536 }
 0x38d   :  { %v1330_v28 = vmul.f32 %v1537_v55, %v1265_v2  ;;  %vm1335_vm0 = vweird.f32 %v1537_v55 }
 0x38e   :  { %vm1336_vm2 = vmor %vm1334_vm1, %vm1335_vm0 }
 0x38f   :  { %v1331_v5 = vsub.f32 1.0, %v1330_v28 }
 0x391   :  { %v1332_v57 = vmul.f32 %v1537_v55, %v1331_v5 }
 0x393   :  { %v1333_v29 = vadd.f32 %v1537_v55, %v1332_v57 }
 0x395   :  { %v1337_v44 = vsel %vm1336_vm2, %v1537_v55, %v1333_v29 }
 0x396   :  { %v1342_v16 = vsel %vm1339_vm3, %v1341_v3, %v1337_v44 }
 0x397   :  { %1411 = vperm.xlu0 %1511, %v1342_v16  }
 0x3a1   :  { %v1194_v59 = vpop.xlane.xlu0 %1193 }
 0x3a2   :  { %v1224_v23 = vpop.permute.xlu1 %1223 }
 0x3a3   :  { %v1232_v61 = vadd.f32 %v1224_v23, %v1185_v1 }
 0x3a5   :  { %v1483_v62 = vmul.f32 -1.442695, %v1232_v61 }
 0x3a7   :  { %1538 = vpow2.f32 %v1483_v62 }
 0x3ad   :  { %v1539_v36 = vpop.eup %1538 }
 0x3ae   :  { %v2350_v17 = vadd.f32 1.0, %v1539_v36 }
 0x3b0   :  { %v1325_v28 = vand.u32 2147483648, %v2350_v17  ;;  %vm1319_vm9 = vweird.f32 %v2350_v17  ;;  %v1323_v5 = vand.u32 2147483647, %v2350_v17 }
 0x3b2   :  { %v1326_v16 = vor.u32 1.1754944e-38, %v1325_v28  ;;  %vm1324_vm11 = vcmp.eq.f32.partialorder %v1323_v5, 8.507059e+37  ;;  %v1574_v5 = vld [vmem:[#allocation2 + $0x78] sm:$0xff] }
 0x3b4   :  { %v1212_v22 = vpop.permute.xlu0 %1211 }
 0x3b5   :  { %v1230_v25 = vadd.f32 %v1212_v22, %v1179_v37  ;;  %v1234_v4 = vadd.f32 %v1212_v22, %v1191_v6 }
 0x3b7   :  { %v1481_v42 = vmul.f32 -1.442695, %v1230_v25  ;;  %v1485_v46 = vmul.f32 -1.442695, %v1234_v4 }
 0x3b8   :  { %v1197_v12 = vpop.xlane.xlu2 %1196 }
 0x3b9   :  { %1540 = vpow2.f32 %v1481_v42  ;;  %v1236_v51 = vadd.f32 %v1224_v23, %v1197_v12 }
 0x3ba   :  { %1542 = vpow2.f32 %v1485_v46 }
 0x3bb   :  { %1544 = vrcp.f32 %v2350_v17  ;;  %v1487_v35 = vmul.f32 -1.442695, %v1236_v51 }
 0x3bf   :  { %v1541_v24 = vpop.eup %1540 }
 0x3c0   :  { %v1262_v27 = vadd.f32 1.0, %v1541_v24  ;;  %v1218_v26 = vpop.permute.xlu2 %1217  ;;  %v1543_v47 = vpop.eup %1542 }
 0x3c1   :  { %v1231_v19 = vadd.f32 %v1218_v26, %v1182_v30  ;;  %v1235_v38 = vadd.f32 %v1218_v26, %v1194_v59  ;;  %v2353_v7 = vpop.eup %1544  ;;  %v2355_v48 = vadd.f32 1.0, %v1543_v47 }
 0x3c2   :  { %1546 = vrcp.f32 %v1262_v27  ;;  %v1315_v21 = vmul.f32 %v2353_v7, %v2350_v17  ;;  %v1295_v33 = vand.u32 2147483648, %v1262_v27  ;;  %v1293_v43 = vand.u32 2147483647, %v1262_v27 }
 0x3c3   :  { %v1482_v53 = vmul.f32 -1.442695, %v1231_v19  ;;  %v1486_v45 = vmul.f32 -1.442695, %v1235_v38  ;;  %1548 = vpow2.f32 %v1487_v35  ;;  %vm1289_vm5 = vweird.f32 %v1262_v27 }
 0x3c4   :  { %v1316_v49 = vsub.f32 1.0, %v1315_v21  ;;  %v1296_v56 = vor.u32 1.1754944e-38, %v1295_v33  ;;  %vm1294_vm7 = vcmp.eq.f32.partialorder %v1293_v43, 8.507059e+37  ;;  %vm1320_vm8 = vweird.f32 %v2353_v7 }
 0x3c5   :  { %1550 = vpow2.f32 %v1482_v53  ;;  %vm1321_vm10 = vmor %vm1319_vm9, %vm1320_vm8  ;;  %v1355_v19 = vand.u32 2147483648, %v2355_v48  ;;  %v1353_v38 = vand.u32 2147483647, %v2355_v48 }
 0x3c6   :  { %1552 = vpow2.f32 %v1486_v45  ;;  %v1317_v54 = vmul.f32 %v2353_v7, %v1316_v49 }
 0x3c7   :  { %1554 = vrcp.f32 %v2355_v48 }
 0x3c8   :  { %v1547_v50 = vpop.eup %1546  ;;  %v1318_v20 = vadd.f32 %v2353_v7, %v1317_v54  ;;  %v1568_v54 = vld [vmem:[#allocation2 + $0x28] sm:$0xff] }
 0x3c9   :  { %v1285_v40 = vmul.f32 %v1547_v50, %v1262_v27  ;;  %v1549_v39 = vpop.eup %1548  ;;  %vm1290_vm4 = vweird.f32 %v1547_v50 }
 0x3ca   :  { %v2360_v11 = vadd.f32 1.0, %v1549_v39  ;;  %vm1291_vm6 = vmor %vm1289_vm5, %vm1290_vm4  ;;  %v1322_v29 = vsel %vm1321_vm10, %v2353_v7, %v1318_v20  ;;  %vm1349_vm5 = vweird.f32 %v2355_v48  ;;  %v1356_v7 = vor.u32 1.1754944e-38, %v1355_v19 }
 0x3cb   :  { %v1551_v0 = vpop.eup %1550  ;;  %v1286_v60 = vsub.f32 1.0, %v1285_v40  ;;  %v1327_v59 = vsel %vm1324_vm11, %v1326_v16, %v1322_v29  ;;  %v1577_v16 = vld [vmem:[#allocation2 + $0x60] sm:$0xff] }
 0x3cc   :  { %v1263_v14 = vadd.f32 1.0, %v1551_v0  ;;  %v1553_v41 = vpop.eup %1552  ;;  %v1385_v40 = vand.u32 2147483648, %v2360_v11  ;;  %vm1379_vm9 = vweird.f32 %v2360_v11  ;;  %v1383_v39 = vand.u32 2147483647, %v2360_v11 }
 0x3cd   :  { %v1287_v34 = vmul.f32 %v1547_v50, %v1286_v60  ;;  %v2362_v37 = vadd.f32 1.0, %v1553_v41  ;;  %v2365_v13 = vpop.eup %1554  ;;  %v1566_v41 = vld [vmem:[#allocation2 + $0x48] sm:$0xff] }
 0x3ce   :  { %1556 = vrcp.f32 %v1263_v14  ;;  %v1345_v2 = vmul.f32 %v2365_v13, %v2355_v48  ;;  %v1308_v6 = vand.u32 2147483647, %v1263_v14  ;;  %v1310_v1 = vand.u32 2147483648, %v1263_v14 }
 0x3cf   :  { %v1288_v9 = vadd.f32 %v1547_v50, %v1287_v34  ;;  %1558 = vrcp.f32 %v2362_v37  ;;  %vm1304_vm13 = vweird.f32 %v1263_v14  ;;  %v1370_v42 = vand.u32 2147483648, %v2362_v37 }
 0x3d0   :  { %1560 = vrcp.f32 %v2360_v11  ;;  %v1346_v30 = vsub.f32 1.0, %v1345_v2  ;;  %vm1309_vm0 = vcmp.eq.f32.partialorder %v1308_v6, 8.507059e+37  ;;  %v1311_v36 = vor.u32 1.1754944e-38, %v1310_v1  ;;  %v1578_v1 = vld [vmem:[#allocation2 + $0x68] sm:$0xff] }
 0x3d1   :  { %v1292_v63 = vsel %vm1291_vm6, %v1547_v50, %v1288_v9  ;;  %vm1364_vm1 = vweird.f32 %v2362_v37  ;;  %v1368_v17 = vand.u32 2147483647, %v2362_v37  ;;  %vm1350_vm3 = vweird.f32 %v2365_v13 }
 0x3d2   :  { %v1297_v31 = vsel %vm1294_vm7, %v1296_v56, %v1292_v63  ;;  %v1347_v4 = vmul.f32 %v2365_v13, %v1346_v30  ;;  %v1371_v26 = vor.u32 1.1754944e-38, %v1370_v42  ;;  %vm1351_vm6 = vmor %vm1349_vm5, %vm1350_vm3  ;;  %vm1354_vm7 = vcmp.eq.f32.partialorder %v1353_v38, 8.507059e+37  ;;  %v1569_v56 = vld [vmem:[#allocation2 + $0x50] sm:$0xff] }
 0x3d3   :  { %v1392_v8 = vpop.permute.xlu2 %1391  ;;  %1396 = vperm.xlu1 %1510, %v1297_v31   ;;  %vm1369_vm4 = vcmp.eq.f32.partialorder %v1368_v17, 8.507059e+37  ;;  %v1386_v0 = vor.u32 1.1754944e-38, %v1385_v40  ;;  %vm1384_vm11 = vcmp.eq.f32.partialorder %v1383_v39, 8.507059e+37  ;;  %v1570_v31 = vld [vmem:[#allocation2 + $0x58] sm:$0xff] }
 0x3d4   :  { %v1429_v10 = vmul.f32 %v1563_v15, %v1392_v8  ;;  %v1430_v32 = vmul.f32 %v1564_v18, %v1392_v8  ;;  %v1557_v55 = vpop.eup %1556  ;;  %v1348_v27 = vadd.f32 %v2365_v13, %v1347_v4 }
 0x3d5   :  { %v1300_v52 = vmul.f32 %v1557_v55, %v1263_v14  ;;  %v1559_v57 = vpop.eup %1558  ;;  %vm1305_vm12 = vweird.f32 %v1557_v55  ;;  %v1565_v14 = vld [vmem:[#allocation2 + $0x40] sm:$0xff] }
 0x3d6   :  { %1445 = vst [vmem:[#allocation5] sm:$0xff] %v1429_v10  ;;  %v1561_v58 = vpop.eup %1560  ;;  %v1360_v44 = vmul.f32 %v1559_v57, %v2362_v37  ;;  %vm1365_vm14 = vweird.f32 %v1559_v57  ;;  %vm1306_vm15 = vmor %vm1304_vm13, %vm1305_vm12  ;;  %v1352_v53 = vsel %vm1351_vm6, %v2365_v13, %v1348_v27  ;;  %v1567_v37 = vld [vmem:[#allocation2 + $0x20] sm:$0xff]  ;;  %v1571_v10 = vld [vmem:[#allocation2 + $0x10] sm:$0xff] }
 0x3d7   :  { %1446 = vst [vmem:[#allocation5 + $0x8] sm:$0xff] %v1430_v32  ;;  %v1301_v3 = vsub.f32 1.0, %v1300_v52  ;;  %v1375_v62 = vmul.f32 %v1561_v58, %v2360_v11  ;;  %vm1366_vm2 = vmor %vm1364_vm1, %vm1365_vm14  ;;  %v1357_v21 = vsel %vm1354_vm7, %v1356_v7, %v1352_v53  ;;  %vm1380_vm8 = vweird.f32 %v1561_v58  ;;  %v1572_v32 = vld [vmem:[#allocation2 + $0x18] sm:$0xff] }
 0x3d8   :  { %v1361_v61 = vsub.f32 1.0, %v1360_v44  ;;  %vm1381_vm10 = vmor %vm1379_vm9, %vm1380_vm8 }
 0x3d9   :  { %v1302_v23 = vmul.f32 %v1557_v55, %v1301_v3  ;;  %v1376_v35 = vsub.f32 1.0, %v1375_v62  ;;  %v1576_v3 = vld [vmem:[#allocation2 + $0x38] sm:$0xff] }
 0x3da   :  { %v1362_v25 = vmul.f32 %v1559_v57, %v1361_v61 }
 0x3db   :  { %1406 = vperm.xlu1 %1510, %v1327_v59   ;;  %v1303_v22 = vadd.f32 %v1557_v55, %v1302_v23  ;;  %v1377_v45 = vmul.f32 %v1561_v58, %v1376_v35 }
 0x3dc   :  { %v1363_v46 = vadd.f32 %v1559_v57, %v1362_v25 }
 0x3dd   :  { %v1307_v12 = vsel %vm1306_vm15, %v1557_v55, %v1303_v22  ;;  %v1378_v50 = vadd.f32 %v1561_v58, %v1377_v45  ;;  %v1573_v55 = vld [vmem:[#allocation2 + $0x70] sm:$0xff] }
 0x3de   :  { %v1312_v51 = vsel %vm1309_vm0, %v1311_v36, %v1307_v12  ;;  %v1367_v24 = vsel %vm1366_vm2, %v1559_v57, %v1363_v46 }
 0x3df   :  { %1401 = vperm.xlu2 %1509, %v1312_v51   ;;  %v1372_v47 = vsel %vm1369_vm4, %v1371_v26, %v1367_v24  ;;  %v1382_v48 = vsel %vm1381_vm10, %v1561_v58, %v1378_v50  ;;  %v1575_v58 = vld [vmem:[#allocation2 + $0x30] sm:$0xff] }
 0x3e0   :  { %v1387_v60 = vsel %vm1384_vm11, %v1386_v0, %v1382_v48 }
 0x3e3   :  { %1421 = vperm.xlu1 %1510, %v1372_v47  }
 0x3e7   :  { %1416 = vperm.xlu2 %1509, %v1357_v21  }
 0x3ef   :  { %1426 = vperm.xlu2 %1509, %v1387_v60  }
 0x409   :  { %v1412_v49 = vpop.permute.xlu0 %1411 }
 0x40a   :  { %v1437_v33 = vmul.f32 %v1565_v14, %v1412_v49  ;;  %v1438_v34 = vmul.f32 %v1566_v41, %v1412_v49 }
 0x40c   :  { %1453 = vst [vmem:[#allocation5 + $0x40] sm:$0xff] %v1437_v33 }
 0x40d   :  { %1454 = vst [vmem:[#allocation5 + $0x48] sm:$0xff] %v1438_v34 }
 0x439   :  { %v1402_v43 = vpop.permute.xlu2 %1401 }
 0x43a   :  { %v1433_v9 = vmul.f32 %v1567_v37, %v1402_v43  ;;  %v1434_v13 = vmul.f32 %v1568_v54, %v1402_v43 }
 0x43c   :  { %1449 = vst [vmem:[#allocation5 + $0x20] sm:$0xff] %v1433_v9 }
 0x43d   :  { %1450 = vst [vmem:[#allocation5 + $0x28] sm:$0xff] %v1434_v13 }
 0x441   :  { %v1417_v11 = vpop.permute.xlu2 %1416 }
 0x442   :  { %v1439_v63 = vmul.f32 %v1569_v56, %v1417_v11  ;;  %v1440_v8 = vmul.f32 %v1570_v31, %v1417_v11 }
 0x444   :  { %1455 = vst [vmem:[#allocation5 + $0x50] sm:$0xff] %v1439_v63 }
 0x445   :  { %1456 = vst [vmem:[#allocation5 + $0x58] sm:$0xff] %v1440_v8  ;;  %v1397_v15 = vpop.permute.xlu1 %1396 }
 0x446   :  { %v1431_v18 = vmul.f32 %v1571_v10, %v1397_v15  ;;  %v1432_v20 = vmul.f32 %v1572_v32, %v1397_v15 }
 0x448   :  { %1447 = vst [vmem:[#allocation5 + $0x10] sm:$0xff] %v1431_v18 }
 0x449   :  { %1448 = vst [vmem:[#allocation5 + $0x18] sm:$0xff] %v1432_v20  ;;  %v1427_v2 = vpop.permute.xlu2 %1426 }
 0x44a   :  { %v1443_v28 = vmul.f32 %v1573_v55, %v1427_v2  ;;  %v1444_v52 = vmul.f32 %v1574_v5, %v1427_v2 }
 0x44c   :  { %1459 = vst [vmem:[#allocation5 + $0x70] sm:$0xff] %v1443_v28 }
 0x44d   :  { %1460 = vst [vmem:[#allocation5 + $0x78] sm:$0xff] %v1444_v52  ;;  %v1407_v57 = vpop.permute.xlu1 %1406 }
 0x44e   :  { %v1435_v29 = vmul.f32 %v1575_v58, %v1407_v57  ;;  %v1436_v44 = vmul.f32 %v1576_v3, %v1407_v57 }
 0x450   :  { %1451 = vst [vmem:[#allocation5 + $0x30] sm:$0xff] %v1435_v29 }
 0x451   :  { %1452 = vst [vmem:[#allocation5 + $0x38] sm:$0xff] %v1436_v44 }
 0x455   :  { %v1422_v30 = vpop.permute.xlu1 %1421 }
 0x456   :  { %v1441_v6 = vmul.f32 %v1577_v16, %v1422_v30  ;;  %v1442_v23 = vmul.f32 %v1578_v1, %v1422_v30 }
 0x458   :  { %1457 = vst [vmem:[#allocation5 + $0x60] sm:$0xff] %v1441_v6 }
 0x459   :  { %1458 = vst [vmem:[#allocation5 + $0x68] sm:$0xff] %v1442_v23 }
 0x45a   :  { %1473 = dma.vmem_to_hbm [thread:$0]  %s1466_s12, 2048, %s1468_s15, [#allocation4], %s1632_s23, %s1632_s23, %s1633_s24  }
 0x45b   :  { %1629 = dma.done.wait [#allocation4], 2048  }
 0x45c   :  { %1630 = vsyncadd [#allocation4], 4294965248 }
 0x45d   :  { %1478 = vsyncpa [#allocation3], 1 }
 0x45e   :  { %1479 = vsyncpa [#allocation4], 1 }

</bundles_post_ra>
